<compile_context>
chip_gen: v6e
topology: v6e:2x2x1
jax: 0.10.0
libtpu: 0.0.40
codegen_flags: <defaults>
</compile_context>

<pallas_src>
import numpy as np
import jax
import jax.numpy as jnp
from jax.experimental import pallas as pl
from jax.experimental.pallas import tpu as pltpu


def _round_up(x, m):
    return ((x + m - 1) // m) * m


# ----------------------------------------------------------------------------
# Pallas kernels
# ----------------------------------------------------------------------------
def _matmul_kernel(a_ref, b_ref, o_ref):
    # Single K step: no accumulator scratch, result written directly.
    o_ref[...] = jnp.dot(a_ref[...], b_ref[...],
                         preferred_element_type=jnp.float32).astype(o_ref.dtype)


def pallas_matmul(a, b, tm_max=256):
    """C = A @ B on the MXU (bf16 operands, f32 accumulation).

    K and N are kept whole in a single block (no K grid axis); only M is tiled
    and only when it exceeds `tm_max`, so small problems (e.g. ~20 STFT frames)
    run as ONE un-padded block.  K is zero-padded to a lane multiple (exact).
    The M axis is "parallel" so v7x's two TensorCores split frame blocks when
    there are >= 2 of them.
    VMEM note: a full bf16 (K, N) operand for n_fft=2048 is ~8.4 MB, well under
    the 32 MiB default scoped VMEM on v5e/v6e/v7x.
    """
    M, K = a.shape
    K2, N = b.shape
    assert K == K2
    a = a.astype(jnp.bfloat16)
    b = b.astype(jnp.bfloat16)

    Kp = _round_up(K, 128)                      # zero-pad contraction dim: exact
    if Kp != K:
        a = jnp.pad(a, ((0, 0), (0, Kp - K)))
        b = jnp.pad(b, ((0, Kp - K), (0, 0)))

    if M <= tm_max:
        tm, Mp = M, M                           # full-dim block: no M padding
    else:
        tm = tm_max
        Mp = _round_up(M, tm)
        a = jnp.pad(a, ((0, Mp - M), (0, 0)))

    # TODO(synk): add K/N tiling for configs where a whole (K, N) operand would
    # exceed scoped VMEM (never the case for n_fft <= 2048).
    out = pl.pallas_call(
        _matmul_kernel,
        out_shape=jax.ShapeDtypeStruct((Mp, N), jnp.float32),
        grid_spec=pltpu.PrefetchScalarGridSpec(
            num_scalar_prefetch=0,
            grid=(Mp // tm,),
            in_specs=[pl.BlockSpec((tm, Kp), lambda i: (i, 0)),
                      pl.BlockSpec((Kp, N), lambda i: (0, 0))],
            out_specs=pl.BlockSpec((tm, N), lambda i: (i, 0))),
        compiler_params=pltpu.CompilerParams(
            dimension_semantics=("parallel",)),
    )(a, b)
    return out[:M]


def _pv_synth_kernel(r0_ref, c0_ref, r1_ref, c1_ref, alpha_ref, phase_ref, o_ref):
    # Fused phase-vocoder synthesis: magnitude lerp + polar->rect (f32 on VPU/EUP,
    # which also suits v5e's lack of bf16 VPU/EUP).  Output is the [re | im] slab
    # (lane-aligned halves) consumed directly by the ISTFT matmul.
    F = phase_ref.shape[1]                               # lane-padded n_freq (mult of 128)
    a = alpha_ref[...]                                   # [n_out, 1] lane-broadcast
    mag0 = jnp.sqrt(r0_ref[...] ** 2 + c0_ref[...] ** 2)
    mag1 = jnp.sqrt(r1_ref[...] ** 2 + c1_ref[...] ** 2)
    mag = (1.0 - a) * mag0 + a * mag1
    ph = phase_ref[...]
    o_ref[:, :F] = mag * jnp.cos(ph)
    o_ref[:, F:] = mag * jnp.sin(ph)


def pallas_pv_synth(r0, c0, r1, c1, alpha, phase):
    n_out, F = r0.shape
    return pl.pallas_call(
        _pv_synth_kernel,
        out_shape=jax.ShapeDtypeStruct((n_out, 2 * F), jnp.float32),
    )(r0, c0, r1, c1, alpha, phase)


def _lerp_kernel(y0_ref, y1_ref, w_ref, o_ref):
    w = w_ref[...]
    o_ref[...] = (1.0 - w) * y0_ref[...] + w * y1_ref[...]


def pallas_lerp(y0, y1, w):
    """(1-w)*y0 + w*y1 for 1-D arrays, run lane-dense as [rows, 128]."""
    n = int(y0.shape[0])
    npad = _round_up(n, 128)

    def as2d(v):
        return jnp.pad(v.astype(jnp.float32), (0, npad - n)).reshape(npad // 128, 128)

    out = pl.pallas_call(
        _lerp_kernel,
        out_shape=jax.ShapeDtypeStruct((npad // 128, 128), jnp.float32),
    )(as2d(y0), as2d(y1), as2d(w))
    return out.reshape(-1)[:n]


# ----------------------------------------------------------------------------
# PitchShift module
# ----------------------------------------------------------------------------
class PitchShift:
    # TODO(synk): librosa's internal time_stretch uses n_fft=2048/hop=512; a smaller
    # n_fft is used here so the demo signal (T=1024) produces a meaningful spectrogram.
    def __init__(self, sample_rate, shift=0.0, n_fft=256, bins_per_octave=12):
        self.sample_rate = float(sample_rate)
        self.shift = float(shift)
        self.n_fft = int(n_fft)
        self.hop = self.n_fft // 4
        assert self.n_fft % self.hop == 0
        self.bins_per_octave = int(bins_per_octave)
        n_fft = self.n_fft
        n_freq = n_fft // 2 + 1
        self.n_freq = n_freq
        Fp = _round_up(n_freq, 128)           # lane-padded bin count (e.g. 129 -> 256)
        self.n_freq_pad = Fp

        # Host-side constant construction, hoisted out of the per-call path.
        n = np.arange(n_fft, dtype=np.float64)
        window = 0.5 - 0.5 * np.cos(2.0 * np.pi * n / n_fft)       # periodic Hann
        self.window = window.astype(np.float32)

        k = np.arange(n_freq, dtype=np.float64)
        ang = 2.0 * np.pi * n[:, None] * k[None, :] / n_fft         # [n_fft, n_freq]

        # Forward basis, padded to lane-aligned [re(Fp) | im(Fp)] column layout.
        # Analysis window folded into the basis (kills an elementwise mul).
        fwd = np.zeros((n_fft, 2 * Fp), np.float64)
        fwd[:, :n_freq] = np.cos(ang)
        fwd[:, Fp:Fp + n_freq] = -np.sin(ang)
        self.stft_basis = jnp.asarray(
            (window[:, None] * fwd).astype(np.float32)).astype(jnp.bfloat16)

        # Inverse basis with matching padded row layout; synthesis window folded in.
        wk = np.where((k == 0) | (k == n_fft // 2), 1.0, 2.0)[:, None]
        iang = ang.T                                                 # [n_freq, n_fft]
        inv = np.zeros((2 * Fp, n_fft), np.float64)
        inv[:n_freq, :] = wk * np.cos(iang) / n_fft
        inv[Fp:Fp + n_freq, :] = -wk * np.sin(iang) / n_fft
        self.istft_basis = jnp.asarray(
            (inv * window[None, :]).astype(np.float32)).astype(jnp.bfloat16)

        phi = np.zeros(Fp, np.float32)
        phi[:n_freq] = np.linspace(0.0, np.pi * self.hop, n_freq)
        self.phi_advance = phi

        self._forward = jax.jit(self._impl)

    # ------------------------------------------------------------------ stages
    def _stft(self, y):
        n_fft, hop = self.n_fft, self.hop
        pad = n_fft // 2
        ypad = jnp.pad(y, (pad, pad))                   # librosa pad_mode="constant"
        t_pad = int(ypad.shape[0])
        n_frames = 1 + (t_pad - n_fft) // hop
        n_chunks = n_fft // hop
        # Overlapping frames from contiguous hop-sized slices (no XLA gather).
        s = ypad[: (n_frames + n_chunks - 1) * hop].reshape(n_frames + n_chunks - 1, hop)
        frames = jnp.concatenate([s[j: j + n_frames] for j in range(n_chunks)], axis=1)
        return pallas_matmul(frames, self.stft_basis)   # [n_frames, 2*Fp] f32

    def _phase_vocoder(self, spec, rate):
        Fp = self.n_freq_pad
        n_frames = int(spec.shape[0])
        re = spec[:, :Fp]                               # lane-aligned halves
        im = spec[:, Fp:]

        steps = np.arange(0.0, n_frames, rate)          # static (rate is python float)
        lo = np.floor(steps).astype(np.int32)
        alpha = jnp.asarray((steps - np.floor(steps)).astype(np.float32))[:, None]
        phi = jnp.asarray(self.phi_advance)[None, :]    # [1, Fp]

        re_p = jnp.pad(re, ((0, 2), (0, 0)))
        im_p = jnp.pad(im, ((0, 2), (0, 0)))
        lo_j = jnp.asarray(lo)
        r0, c0 = re_p[lo_j], im_p[lo_j]
        r1, c1 = re_p[lo_j + 1], im_p[lo_j + 1]

        # TODO(synk): arctan2 has no guaranteed Mosaic lowering, so angle / wrap /
        # cumsum stay as tiny XLA ops (fused under jit); the rest is one Pallas kernel.
        dphase = jnp.arctan2(c1, r1) - jnp.arctan2(c0, r0) - phi
        dphase = dphase - 2.0 * np.pi * jnp.round(dphase / (2.0 * np.pi))
        step_phase = phi + dphase
        phase0 = jnp.arctan2(im[0:1, :], re[0:1, :])
        phase = phase0 + jnp.concatenate(
            [jnp.zeros((1, Fp), jnp.float32),
             jnp.cumsum(step_phase[:-1, :], axis=0)], axis=0)

        # Returns the [re | im] slab consumed directly by the ISTFT matmul.
        return pallas_pv_synth(r0, c0, r1, c1, alpha, phase)   # [n_out, 2*Fp]

    def _istft(self, spec_ri, length):
        n_fft, hop = self.n_fft, self.hop
        n_frames = int(spec_ri.shape[0])
        frames = pallas_matmul(spec_ri, self.istft_basis)      # [n_frames, n_fft], windowed

        # Overlap-add as n_fft/hop shifted chunk adds (no XLA scatter).
        n_chunks = n_fft // hop
        out_rows = n_frames + n_chunks - 1
        acc = jnp.zeros((out_rows, hop), jnp.float32)
        for j in range(n_chunks):
            acc = acc + jnp.pad(frames[:, j * hop:(j + 1) * hop],
                                ((j, n_chunks - 1 - j), (0, 0)))
        y = acc.reshape(-1)                                    # length out_rows*hop

        # Window-sum normalization is data independent -> precompute on the host.
        out_len = out_rows * hop
        wsq = np.zeros(out_len, np.float64)
        w2 = self.window.astype(np.float64) ** 2
        for i in range(n_frames):
            wsq[i * hop: i * hop + n_fft] += w2
        inv = np.where(wsq > 1e-10, 1.0 / np.maximum(wsq, 1e-10), 1.0).astype(np.float32)
        y = y * jnp.asarray(inv)

        start = n_fft // 2
        y = y[start:start + length]
        if int(y.shape[0]) < length:
            y = jnp.pad(y, (0, length - int(y.shape[0])))
        return y

    def _resample(self, y, rate):
        # Linear-interp resample sr/rate -> sr: static gather + Pallas lerp.
        # TODO(synk): librosa's default soxr_hq band-limited resampler has no clean
        # Pallas equivalent; linear interpolation is used instead.
        n_in = int(y.shape[0])
        n_out = int(np.ceil(n_in * rate))
        pos = np.arange(n_out) * (1.0 / rate)
        lo = np.clip(np.floor(pos).astype(np.int32), 0, n_in - 1)
        hi = np.clip(lo + 1, 0, n_in - 1)
        frac = jnp.asarray((pos - np.floor(pos)).astype(np.float32))
        y_lo = jnp.take(y, jnp.asarray(lo))
        y_hi = jnp.take(y, jnp.asarray(hi))
        return pallas_lerp(y_lo, y_hi, frac)

    # ------------------------------------------------------------------ forward
    def _impl(self, audio):
        # audio: [1, T]  (mirrors the torch module's .squeeze(0) / .unsqueeze(0))
        y = audio[0].astype(jnp.float32)
        T = int(y.shape[0])
        rate = 2.0 ** (-self.shift / self.bins_per_octave)

        # --- time stretch by `rate` (phase vocoder) ---
        spec = self._stft(y)
        spec_ri = self._phase_vocoder(spec, rate)
        len_stretch = int(round(T / rate))
        y_stretch = self._istft(spec_ri, len_stretch)

        # --- resample sr/rate -> sr ---
        y_shift = self._resample(y_stretch, rate)

        # --- fix_length to input length ---
        n = int(y_shift.shape[0])
        if n >= T:
            y_shift = y_shift[:T]
        else:
            y_shift = jnp.pad(y_shift, (0, T - n))
        return y_shift[None, :]

    def __call__(self, audio):
        return self._forward(audio)


if __name__ == "__main__":
    key = jax.random.PRNGKey(0)
    sr = 8000
    T = 1024
    t = jnp.arange(T, dtype=jnp.float32) / sr
    audio = (0.5 * jnp.sin(2.0 * jnp.pi * 220.0 * t)
             + 0.1 * jax.random.normal(key, (T,), jnp.float32))[None, :]   # [1, T]

    ps = PitchShift(sample_rate=sr, shift=2.0)
    out = jax.block_until_ready(ps(audio))

    assert out.shape == audio.shape, (out.shape, audio.shape)
    assert out.dtype == jnp.float32
    assert bool(jnp.all(jnp.isfinite(out)))
    print("KERNEL_OK")
</pallas_src>

<mosaic_0001>
module attributes {stable_mosaic.version = 11 : i64} {
  func.func @_matmul_kernel(%arg0: i32, %arg1: memref<17x256xbf16, #tpu.memory_space<vmem>>, %arg2: memref<256x512xbf16, #tpu.memory_space<vmem>>, %arg3: memref<17x512xf32, #tpu.memory_space<vmem>>) attributes {dimension_semantics = [#tpu.dimension_semantics<parallel>], iteration_bounds = array<i64: 1>, scalar_prefetch = 0 : i64, scratch_operands = 0 : i64, tpu.core_type = #tpu.core_type<tc>, window_params = [{transform_indices = @transform_0, window_bounds = array<i64: 17, 256>}, {pipeline_mode = #tpu.pipeline_mode<synchronous>, transform_indices = @transform_1, window_bounds = array<i64: 256, 512>}, {transform_indices = @transform_2, window_bounds = array<i64: 17, 512>}]} {
    %c0 = arith.constant 0 : index
    %c0_0 = arith.constant 0 : index
    %0 = vector.load %arg1[%c0, %c0_0] : memref<17x256xbf16, #tpu.memory_space<vmem>>, vector<17x256xbf16>
    %c0_1 = arith.constant 0 : index
    %c0_2 = arith.constant 0 : index
    %1 = vector.load %arg2[%c0_1, %c0_2] : memref<256x512xbf16, #tpu.memory_space<vmem>>, vector<256x512xbf16>
    %cst = arith.constant dense<0.000000e+00> : vector<17x512xf32>
    %2 = tpu.matmul %0, %1, %cst {dimension_numbers = #tpu.dot_dimension_numbers<[1], [0], [0], [1], [0, 0, 1, 1], [], []>} : vector<17x256xbf16>, vector<256x512xbf16>, vector<17x512xf32> -> vector<17x512xf32>
    %c0_3 = arith.constant 0 : index
    %c0_4 = arith.constant 0 : index
    %3 = vector.load %arg3[%c0_3, %c0_4] : memref<17x512xf32, #tpu.memory_space<vmem>>, vector<17x512xf32>
    tpu.vector_store %arg3[%c0_3, %c0_4], %2 {strides = array<i32>} : memref<17x512xf32, #tpu.memory_space<vmem>>, vector<17x512xf32>,
    return
  }
  func.func @transform_0(%arg0: i32) -> (i32, i32) {
    %c0_i32 = arith.constant 0 : i32
    %c0_i32_0 = arith.constant 0 : i32
    return %arg0, %c0_i32 : i32, i32
  }
  func.func @transform_1(%arg0: i32) -> (i32, i32) {
    %c0_i32 = arith.constant 0 : i32
    %c0_i32_0 = arith.constant 0 : i32
    %c0_i32_1 = arith.constant 0 : i32
    return %c0_i32, %c0_i32_0 : i32, i32
  }
  func.func @transform_2(%arg0: i32) -> (i32, i32) {
    %c0_i32 = arith.constant 0 : i32
    %c0_i32_0 = arith.constant 0 : i32
    return %arg0, %c0_i32 : i32, i32
  }
}

module attributes {stable_mosaic.version = 11 : i64} {
  func.func @_pv_synth_kernel(%arg0: memref<20x256xf32, #tpu.memory_space<vmem>>, %arg1: memref<20x256xf32, #tpu.memory_space<vmem>>, %arg2: memref<20x256xf32, #tpu.memory_space<vmem>>, %arg3: memref<20x256xf32, #tpu.memory_space<vmem>>, %arg4: memref<20x1xf32, #tpu.memory_space<vmem>>, %arg5: memref<20x256xf32, #tpu.memory_space<vmem>>, %arg6: memref<20x512xf32, #tpu.memory_space<vmem>>) attributes {dimension_semantics = [], scalar_prefetch = 0 : i64, scratch_operands = 0 : i64, tpu.core_type = #tpu.core_type<tc>} {
    %c0 = arith.constant 0 : index
    %c0_0 = arith.constant 0 : index
    %0 = vector.load %arg4[%c0, %c0_0] : memref<20x1xf32, #tpu.memory_space<vmem>>, vector<20x1xf32>
    %c0_1 = arith.constant 0 : index
    %c0_2 = arith.constant 0 : index
    %1 = vector.load %arg0[%c0_1, %c0_2] : memref<20x256xf32, #tpu.memory_space<vmem>>, vector<20x256xf32>
    %2 = arith.mulf %1, %1 : vector<20x256xf32>
    %c0_3 = arith.constant 0 : index
    %c0_4 = arith.constant 0 : index
    %3 = vector.load %arg1[%c0_3, %c0_4] : memref<20x256xf32, #tpu.memory_space<vmem>>, vector<20x256xf32>
    %4 = arith.mulf %3, %3 : vector<20x256xf32>
    %5 = arith.addf %2, %4 : vector<20x256xf32>
    %6 = math.sqrt %5 : vector<20x256xf32>
    %c0_5 = arith.constant 0 : index
    %c0_6 = arith.constant 0 : index
    %7 = vector.load %arg2[%c0_5, %c0_6] : memref<20x256xf32, #tpu.memory_space<vmem>>, vector<20x256xf32>
    %8 = arith.mulf %7, %7 : vector<20x256xf32>
    %c0_7 = arith.constant 0 : index
    %c0_8 = arith.constant 0 : index
    %9 = vector.load %arg3[%c0_7, %c0_8] : memref<20x256xf32, #tpu.memory_space<vmem>>, vector<20x256xf32>
    %10 = arith.mulf %9, %9 : vector<20x256xf32>
    %11 = arith.addf %8, %10 : vector<20x256xf32>
    %12 = math.sqrt %11 : vector<20x256xf32>
    %cst = arith.constant 1.000000e+00 : f32
    %13 = vector.broadcast %cst : f32 to vector<20x1xf32>
    %14 = arith.subf %13, %0 : vector<20x1xf32>
    %15 = vector.broadcast %14 : vector<20x1xf32> to vector<20x256xf32>
    %16 = arith.mulf %15, %6 : vector<20x256xf32>
    %17 = vector.broadcast %0 : vector<20x1xf32> to vector<20x256xf32>
    %18 = arith.mulf %17, %12 : vector<20x256xf32>
    %19 = arith.addf %16, %18 : vector<20x256xf32>
    %c0_9 = arith.constant 0 : index
    %c0_10 = arith.constant 0 : index
    %20 = vector.load %arg5[%c0_9, %c0_10] : memref<20x256xf32, #tpu.memory_space<vmem>>, vector<20x256xf32>
    %21 = math.cos %20 : vector<20x256xf32>
    %22 = arith.mulf %19, %21 : vector<20x256xf32>
    %c0_11 = arith.constant 0 : index
    %c0_12 = arith.constant 0 : index
    %23 = vector.load %arg6[%c0_11, %c0_12] : memref<20x512xf32, #tpu.memory_space<vmem>>, vector<20x256xf32>
    tpu.vector_store %arg6[%c0_11, %c0_12], %22 {strides = array<i32>} : memref<20x512xf32, #tpu.memory_space<vmem>>, vector<20x256xf32>,
    %24 = math.sin %20 : vector<20x256xf32>
    %25 = arith.mulf %19, %24 : vector<20x256xf32>
    %c0_13 = arith.constant 0 : index
    %c256 = arith.constant 256 : index
    %26 = vector.load %arg6[%c0_13, %c256] : memref<20x512xf32, #tpu.memory_space<vmem>>, vector<20x256xf32>
    tpu.vector_store %arg6[%c0_13, %c256], %25 {strides = array<i32>} : memref<20x512xf32, #tpu.memory_space<vmem>>, vector<20x256xf32>,
    return
  }
}

module attributes {stable_mosaic.version = 11 : i64} {
  func.func @_matmul_kernel(%arg0: i32, %arg1: memref<20x512xbf16, #tpu.memory_space<vmem>>, %arg2: memref<512x256xbf16, #tpu.memory_space<vmem>>, %arg3: memref<20x256xf32, #tpu.memory_space<vmem>>) attributes {dimension_semantics = [#tpu.dimension_semantics<parallel>], iteration_bounds = array<i64: 1>, scalar_prefetch = 0 : i64, scratch_operands = 0 : i64, tpu.core_type = #tpu.core_type<tc>, window_params = [{transform_indices = @transform_0, window_bounds = array<i64: 20, 512>}, {pipeline_mode = #tpu.pipeline_mode<synchronous>, transform_indices = @transform_1, window_bounds = array<i64: 512, 256>}, {transform_indices = @transform_2, window_bounds = array<i64: 20, 256>}]} {
    %c0 = arith.constant 0 : index
    %c0_0 = arith.constant 0 : index
    %0 = vector.load %arg1[%c0, %c0_0] : memref<20x512xbf16, #tpu.memory_space<vmem>>, vector<20x512xbf16>
    %c0_1 = arith.constant 0 : index
    %c0_2 = arith.constant 0 : index
    %1 = vector.load %arg2[%c0_1, %c0_2] : memref<512x256xbf16, #tpu.memory_space<vmem>>, vector<512x256xbf16>
    %cst = arith.constant dense<0.000000e+00> : vector<20x256xf32>
    %2 = tpu.matmul %0, %1, %cst {dimension_numbers = #tpu.dot_dimension_numbers<[1], [0], [0], [1], [0, 0, 1, 1], [], []>} : vector<20x512xbf16>, vector<512x256xbf16>, vector<20x256xf32> -> vector<20x256xf32>
    %c0_3 = arith.constant 0 : index
    %c0_4 = arith.constant 0 : index
    %3 = vector.load %arg3[%c0_3, %c0_4] : memref<20x256xf32, #tpu.memory_space<vmem>>, vector<20x256xf32>
    tpu.vector_store %arg3[%c0_3, %c0_4], %2 {strides = array<i32>} : memref<20x256xf32, #tpu.memory_space<vmem>>, vector<20x256xf32>,
    return
  }
  func.func @transform_0(%arg0: i32) -> (i32, i32) {
    %c0_i32 = arith.constant 0 : i32
    %c0_i32_0 = arith.constant 0 : i32
    return %arg0, %c0_i32 : i32, i32
  }
  func.func @transform_1(%arg0: i32) -> (i32, i32) {
    %c0_i32 = arith.constant 0 : i32
    %c0_i32_0 = arith.constant 0 : i32
    %c0_i32_1 = arith.constant 0 : i32
    return %c0_i32, %c0_i32_0 : i32, i32
  }
  func.func @transform_2(%arg0: i32) -> (i32, i32) {
    %c0_i32 = arith.constant 0 : i32
    %c0_i32_0 = arith.constant 0 : i32
    return %arg0, %c0_i32 : i32, i32
  }
}

module attributes {stable_mosaic.version = 11 : i64} {
  func.func @_lerp_kernel(%arg0: memref<8x128xf32, #tpu.memory_space<vmem>>, %arg1: memref<8x128xf32, #tpu.memory_space<vmem>>, %arg2: memref<8x128xf32, #tpu.memory_space<vmem>>, %arg3: memref<8x128xf32, #tpu.memory_space<vmem>>) attributes {dimension_semantics = [], scalar_prefetch = 0 : i64, scratch_operands = 0 : i64, tpu.core_type = #tpu.core_type<tc>} {
    %c0 = arith.constant 0 : index
    %c0_0 = arith.constant 0 : index
    %0 = vector.load %arg2[%c0, %c0_0] : memref<8x128xf32, #tpu.memory_space<vmem>>, vector<8x128xf32>
    %cst = arith.constant 1.000000e+00 : f32
    %1 = vector.broadcast %cst : f32 to vector<8x128xf32>
    %2 = arith.subf %1, %0 : vector<8x128xf32>
    %c0_1 = arith.constant 0 : index
    %c0_2 = arith.constant 0 : index
    %3 = vector.load %arg0[%c0_1, %c0_2] : memref<8x128xf32, #tpu.memory_space<vmem>>, vector<8x128xf32>
    %4 = arith.mulf %2, %3 : vector<8x128xf32>
    %c0_3 = arith.constant 0 : index
    %c0_4 = arith.constant 0 : index
    %5 = vector.load %arg1[%c0_3, %c0_4] : memref<8x128xf32, #tpu.memory_space<vmem>>, vector<8x128xf32>
    %6 = arith.mulf %0, %5 : vector<8x128xf32>
    %7 = arith.addf %4, %6 : vector<8x128xf32>
    %c0_5 = arith.constant 0 : index
    %c0_6 = arith.constant 0 : index
    %8 = vector.load %arg3[%c0_5, %c0_6] : memref<8x128xf32, #tpu.memory_space<vmem>>, vector<8x128xf32>
    tpu.vector_store %arg3[%c0_5, %c0_6], %7 {strides = array<i32>} : memref<8x128xf32, #tpu.memory_space<vmem>>, vector<8x128xf32>,
    return
  }
}

</mosaic_0001>

<bundles_post_ra>
// kernel: _impl.5
= control target key start
LH: loop header
LB: loop body
LE: loop exit
PB: predicated region body
PF: predicated region fallthrough
CT: control target
= control target key end

     0   :  { %v1626_v0 = vmov 0   ;;  %v1627_v24 = vmov 683565275   ;;  %v1628_v26 = vmov 2475754826   ;;  %s2542_s4 = inlined_call_operand.vmem [shape: f32[20,1], index: 4, kind: input, shape index: {}]   ;;  %s2543_s5 = inlined_call_operand.vmem [shape: f32[20,256], index: 5, kind: input, shape index: {}]   ;;  %s2544_s2 = inlined_call_operand.vmem [shape: f32[20,256], index: 2, kind: input, shape index: {}]   ;;  %s2545_s3 = inlined_call_operand.vmem [shape: f32[20,256], index: 3, kind: input, shape index: {}]   ;;  %s2546_s0 = inlined_call_operand.vmem [shape: f32[20,256], index: 0, kind: input, shape index: {}]   ;;  %s2547_s1 = inlined_call_operand.vmem [shape: f32[20,256], index: 1, kind: input, shape index: {}]   ;;  %s2548_s6 = inlined_call_operand.vmem [shape: f32[20,512], index: 6, kind: output, shape index: {}]  }
   0x1   :  { %1576 = vset.pattern.permute.xlu1 %v1626_v0  ;;  %v23_v1 = vld [vmem:[%s2542_s4] sm:$0xff]  ;;  %1577 = vset.pattern.permute.xlu0 %v1626_v0  ;;  %v25_v2 = vld [vmem:[%s2542_s4 + $0x10] sm:$0xf]  ;;  %v24_v3 = vld [vmem:[%s2542_s4 + $0x8] sm:$0xff]  ;;  %v1629_v28 = vmov 2131351028  }
   0x2   :  { %196 = vperm.xlu1 %1576, %v23_v1   ;;  %v170_v4 = vsub.f32 1.0, %v23_v1  ;;  %v172_v5 = vsub.f32 1.0, %v25_v2  ;;  %v1680_v6 = vld [vmem:[%s2543_s5] sm:$0xff]  ;;  %v171_v7 = vsub.f32 1.0, %v24_v3  ;;  %v1687_v11 = vld [vmem:[%s2543_s5 + $0x8] sm:$0xff] }
   0x3   :  { %v230_v8 = vand.u32 2139095040, %v1680_v6  ;;  %v227_v9 = vand.u32 2147483647, %v1680_v6  ;;  %v333_v14 = vand.u32 2139095040, %v1687_v11  ;;  %v330_v22 = vand.u32 2147483647, %v1687_v11 }
   0x4   :  { %175 = vperm.xlu0 %1577, %v170_v4   ;;  %v1630_v30 = vmov 2102212464   ;;  %v1631_v32 = vmov 920167782   ;;  %v1632_v41 = vmov 1326507024  }
   0x5   :  { %v231_v10 = vshrl.u32 %v230_v8, 23  ;;  %v234_v13 = vand.u32 8388607, %v227_v9  ;;  %v334_v16 = vshrl.u32 %v333_v14, 23  ;;  %v337_v43 = vand.u32 8388607, %v330_v22 }
   0x6   :  { %185 = vperm.xlu1 %1576, %v172_v5   ;;  %v98_v44 = vld [vmem:[%s2544_s2] sm:$0xff]  ;;  %v99_v45 = vld [vmem:[%s2544_s2 + $0x8] sm:$0xff] }
   0x7   :  { %v1497_v12 = vadd.s32 4294967169, %v231_v10  ;;  %v235_v17 = vor.u32 8388608, %v234_v13  ;;  %v1501_v19 = vadd.s32 4294967169, %v334_v16  ;;  %v110_v49 = vld [vmem:[%s2545_s3] sm:$0xff]  ;;  %v1720_v55 = vmul.f32 %v98_v44, %v98_v44  ;;  %v111_v59 = vld [vmem:[%s2545_s3 + $0x8] sm:$0xff] }
   0x8   :  { %180 = vperm.xlu0 %1577, %v171_v7   ;;  %v1722_v56 = vmul.f32 %v99_v45, %v99_v45  ;;  %v116_v60 = vmul.f32 %v110_v49, %v110_v49  ;;  %v338_v63 = vor.u32 8388608, %v337_v43  ;;  %v26_v0 = vld [vmem:[%s2546_s0] sm:$0xff] }
   0x9   :  { %v237_v15 = vadd.s32 1, %v1497_v12  ;;  %v1698_v34 = vshll.u32 %v235_v17, 8  ;;  %v340_v35 = vadd.s32 1, %v1501_v19  ;;  %v117_v12 = vmul.f32 %v111_v59, %v111_v59  ;;  %v38_v44 = vld [vmem:[%s2547_s1] sm:$0xff] }
   0xa   :  { %206 = vperm.xlu1 %1576, %v25_v2   ;;  %v1749_v19 = vshll.u32 %v338_v63, 8 }
   0xb   :  { %vm238_vm0 = vcmp.gt.s32.totalorder %v237_v15, 0  ;;  %vm341_vm5 = vcmp.gt.s32.totalorder %v340_v35, 0 }
   0xc   :  { %201 = vperm.xlu0 %1577, %v24_v3   ;;  %v239_v18 = vsel %vm238_vm0, %v237_v15, 0  ;;  %v342_v4 = vsel %vm341_vm5, %v340_v35, 0  ;;  %v32_v15 = vmul.f32 %v26_v0, %v26_v0  ;;  %vm229_vm0 = vcmp.lt.s32.totalorder %v1680_v6, 0 }
   0xd   :  { %v241_v20 = vand.u32 31, %v239_v18  ;;  %v240_v21 = vshrl.u32 %v239_v18, 5  ;;  %v343_v10 = vshrl.u32 %v342_v4, 5  ;;  %v344_v14 = vand.u32 31, %v342_v4 }
   0xe   :  { %vm332_vm5 = vcmp.lt.s32.totalorder %v1687_v11, 0 }
   0xf   :  { %v242_v23 = vsub.s32 32, %v241_v20  ;;  %v244_v25 = vshll.u32 %v1627_v24, %v241_v20  ;;  %v247_v27 = vshll.u32 %v1628_v26, %v241_v20  ;;  %v250_v29 = vshll.u32 %v1629_v28, %v241_v20 }
  0x10   :  { %v253_v31 = vshll.u32 %v1630_v30, %v241_v20  ;;  %v256_v33 = vshll.u32 %v1631_v32, %v241_v20  ;;  %vm259_vm1 = vcmp.lt.s32.totalorder %v240_v21, 1  ;;  %vm262_vm2 = vcmp.lt.s32.totalorder %v240_v21, 4 }
  0x11   :  { %v243_v36 = vshrl.u32 %v1627_v24, %v242_v23  ;;  %v245_v37 = vshrl.u32 %v1628_v26, %v242_v23  ;;  %v248_v38 = vshrl.u32 %v1629_v28, %v242_v23  ;;  %v251_v39 = vshrl.u32 %v1630_v30, %v242_v23 }
  0x12   :  { %v254_v40 = vshrl.u32 %v1631_v32, %v242_v23  ;;  %v257_v42 = vshrl.u32 %v1632_v41, %v242_v23  ;;  %vm260_vm3 = vcmp.lt.s32.totalorder %v240_v21, 2  ;;  %vm261_vm4 = vcmp.lt.s32.totalorder %v240_v21, 3 }
  0x13   :  { %v246_v46 = vor.u32 %v245_v37, %v244_v25  ;;  %v249_v47 = vor.u32 %v248_v38, %v247_v27  ;;  %v252_v48 = vor.u32 %v251_v39, %v250_v29  ;;  %v345_v20 = vsub.s32 32, %v344_v14 }
  0x14   :  { %v255_v50 = vor.u32 %v254_v40, %v253_v31  ;;  %v258_v51 = vor.u32 %v257_v42, %v256_v33  ;;  %v347_v23 = vshll.u32 %v1627_v24, %v344_v14  ;;  %v350_v25 = vshll.u32 %v1628_v26, %v344_v14 }
  0x15   :  { %v263_v52 = vsel %vm259_vm1, %v243_v36, %v246_v46  ;;  %v264_v53 = vsel %vm262_vm2, %v252_v48, 2102212464  ;;  %v267_v54 = vsel %vm259_vm1, %v246_v46, %v249_v47  ;;  %v271_v62 = vsel %vm259_vm1, %v249_v47, %v252_v48 }
  0x16   :  { %v265_v57 = vsel %vm261_vm4, %v249_v47, %v264_v53  ;;  %v268_v58 = vsel %vm262_vm2, %v255_v50, 920167782  ;;  %v272_v3 = vsel %vm262_vm2, %v258_v51, 1326507024  ;;  %v353_v27 = vshll.u32 %v1629_v28, %v344_v14 }
  0x17   :  { %v269_v61 = vsel %vm261_vm4, %v252_v48, %v268_v58  ;;  %v266_v1 = vsel %vm260_vm3, %v263_v52, %v265_v57  ;;  %v273_v5 = vsel %vm261_vm4, %v255_v50, %v272_v3  ;;  %v356_v29 = vshll.u32 %v1630_v30, %v344_v14 }
  0x18   :  { %v270_v2 = vsel %vm260_vm3, %v267_v54, %v269_v61  ;;  %v274_v13 = vsel %vm260_vm3, %v271_v62, %v273_v5  ;;  %v282_v18 = vmul.u32 %v1698_v34, %v266_v1  ;;  %v359_v31 = vshll.u32 %v1631_v32, %v344_v14 }
  0x19   :  { %v1739_v7 = vmul.u32.u64.low %v1698_v34, %v270_v2  ;;  %v1740_v8 = vmul.u32.u64.high %v1698_v34, %v270_v2, %v1739_v7  ;;  %v1745_v16 = vmul.u32.u64.low %v1698_v34, %v274_v13  ;;  %v1746_v17 = vmul.u32.u64.high %v1698_v34, %v274_v13, %v1745_v16 }
  0x1a   :  { %vm362_vm6 = vcmp.lt.s32.totalorder %v343_v10, 1  ;;  %v348_v33 = vshrl.u32 %v1628_v26, %v345_v20  ;;  %v351_v34 = vshrl.u32 %v1629_v28, %v345_v20  ;;  %v354_v35 = vshrl.u32 %v1630_v30, %v345_v20  ;;  %v27_v16 = vld [vmem:[%s2546_s0 + $0x8] sm:$0xff] }
  0x1b   :  { %v285_v21 = vadd.s32 1, %v1740_v8  ;;  %vm364_vm7 = vcmp.lt.s32.totalorder %v343_v10, 3  ;;  %vm284_vm8 = vc.u32 %v1746_v17, %v1739_v7  ;;  %v346_v36 = vshrl.u32 %v1627_v24, %v345_v20 }
  0x1c   :  { %v357_v37 = vshrl.u32 %v1631_v32, %v345_v20  ;;  %v360_v38 = vshrl.u32 %v1632_v41, %v345_v20  ;;  %v349_v40 = vor.u32 %v348_v33, %v347_v23  ;;  %v352_v42 = vor.u32 %v351_v34, %v350_v25  ;;  %v41_v33 = vld [vmem:[%s2547_s1 + $0x18] sm:$0xff] }
  0x1d   :  { %v286_v39 = vsel %vm284_vm8, %v285_v21, %v1740_v8  ;;  %v355_v43 = vor.u32 %v354_v35, %v353_v27  ;;  %vm365_vm9 = vcmp.lt.s32.totalorder %v343_v10, 4  ;;  %vm363_vm10 = vcmp.lt.s32.totalorder %v343_v10, 2  ;;  %v29_v21 = vld [vmem:[%s2546_s0 + $0x18] sm:$0xff] }
  0x1e   :  { %v287_v45 = vadd.s32 %v286_v39, %v282_v18  ;;  %v358_v46 = vor.u32 %v357_v37, %v356_v29  ;;  %v361_v47 = vor.u32 %v360_v38, %v359_v31  ;;  %v370_v49 = vsel %vm362_vm6, %v349_v40, %v352_v42  ;;  %v39_v18 = vld [vmem:[%s2547_s1 + $0x8] sm:$0xff]  ;;  %v40_v31 = vld [vmem:[%s2547_s1 + $0x10] sm:$0xff] }
  0x1f   :  { %v367_v48 = vsel %vm365_vm9, %v355_v43, 2102212464  ;;  %v374_v50 = vsel %vm362_vm6, %v352_v42, %v355_v43  ;;  %v44_v54 = vmul.f32 %v38_v44, %v38_v44  ;;  %v366_v57 = vsel %vm362_vm6, %v346_v36, %v349_v40 }
  0x20   :  { %v288_v51 = vadd.s32 536870912, %v287_v45  ;;  %v371_v52 = vsel %vm365_vm9, %v358_v46, 920167782  ;;  %v375_v53 = vsel %vm365_vm9, %v361_v47, 1326507024  ;;  %v368_v58 = vsel %vm364_vm7, %v352_v42, %v367_v48 }
  0x21   :  { %v372_v59 = vsel %vm364_vm7, %v355_v43, %v371_v52  ;;  %v376_v61 = vsel %vm364_vm7, %v358_v46, %v375_v53  ;;  %v1776_v62 = vadd.f32 %v116_v60, %v1720_v55  ;;  %v1792_v8 = vadd.f32 %v117_v12, %v1722_v56 }
  0x22   :  { %v1778_v63 = vshrl.u32 %v288_v51, 30  ;;  %v373_v0 = vsel %vm363_vm10, %v370_v49, %v372_v59  ;;  %v377_v1 = vsel %vm363_vm10, %v374_v50, %v376_v61  ;;  %v369_v60 = vsel %vm363_vm10, %v366_v57, %v368_v58  ;;  %v30_v59 = vld [vmem:[%s2546_s0 + $0x20] sm:$0xf] }
  0x23   :  { %v1783_v2 = vmul.u32.u64.low %v1749_v19, %v377_v1  ;;  %v1784_v3 = vmul.u32.u64.high %v1749_v19, %v377_v1, %v1783_v2  ;;  %v1787_v4 = vmul.u32.u64.low %v1749_v19, %v373_v0  ;;  %v1788_v5 = vmul.u32.u64.high %v1749_v19, %v373_v0, %v1787_v4 }
  0x24   :  { %v290_v55 = vshll.u32 %v1778_v63, 30  ;;  %v1796_v13 = vadd.f32 %v44_v54, %v32_v15  ;;  %1578 = vrsqrt.f32 %v1776_v62  ;;  %v385_v56 = vmul.u32 %v1749_v19, %v369_v60  ;;  %v28_v19 = vld [vmem:[%s2546_s0 + $0x10] sm:$0xff]  ;;  %v31_v2 = vld [vmem:[%s2546_s0 + $0x28] sm:$0xf] }
  0x25   :  { %vm387_vm11 = vc.u32 %v1784_v3, %v1787_v4  ;;  %v388_v10 = vadd.s32 1, %v1788_v5  ;;  %1580 = vrsqrt.f32 %v1792_v8  ;;  %v33_v20 = vmul.f32 %v27_v16, %v27_v16  ;;  %v43_v16 = vld [vmem:[%s2547_s1 + $0x28] sm:$0xf] }
  0x26   :  { %v291_v14 = vsub.s32 %v287_v45, %v290_v55  ;;  %v45_v23 = vmul.f32 %v39_v18, %v39_v18  ;;  %1582 = vrsqrt.f32 %v1796_v13  ;;  %v34_v37 = vmul.f32 %v28_v19, %v28_v19 }
  0x27   :  { %v389_v15 = vsel %vm387_vm11, %v388_v10, %v1788_v5  ;;  %v35_v38 = vmul.f32 %v29_v21, %v29_v21  ;;  %v46_v40 = vmul.f32 %v40_v31, %v40_v31  ;;  %v47_v42 = vmul.f32 %v41_v33, %v41_v33  ;;  %v42_v5 = vld [vmem:[%s2547_s1 + $0x20] sm:$0xf] }
  0x28   :  { %v293_v12 = vsub.s32 0, %v291_v14  ;;  %v390_v27 = vadd.s32 %v389_v15, %v385_v56  ;;  %v1824_v35 = vadd.f32 %v45_v23, %v33_v20  ;;  %v283_v43 = vadd.s32 %v1739_v7, %v1746_v17  ;;  %v1842_v17 = vld [vmem:[%s2543_s5 + $0x20] sm:$0xf] }
  0x29   :  { %v1832_v46 = vadd.f32 %v46_v40, %v34_v37  ;;  %v1834_v50 = vadd.f32 %v47_v42, %v35_v38  ;;  %vm130_vm13 = vcmp.eq.f32.partialorder %v1776_v62, inf  ;;  %vm132_vm14 = vcmp.eq.f32.partialorder %v1776_v62, 0.0 }
  0x2a   :  { %v1498_v25 = vmin.u32 %v293_v12, %v291_v14  ;;  %v391_v34 = vadd.s32 536870912, %v390_v27  ;;  %1584 = vrsqrt.f32 %v1824_v35  ;;  %v133_v57 = vand.u32 2147483648, %v1776_v62 }
  0x2b   :  { %vm137_vm15 = vcmp.eq.f32.partialorder %v1792_v8, inf  ;;  %vm139_vm1 = vcmp.eq.f32.partialorder %v1792_v8, 0.0  ;;  %v140_v60 = vand.u32 2147483648, %v1792_v8  ;;  %v642_v18 = vand.u32 2139095040, %v1842_v17 }
  0x2c   :  { %v295_v29 = vclz %v1498_v25  ;;  %v1826_v39 = vshrl.u32 %v391_v34, 30  ;;  %vm1869_vm2 = vcmp.le.f32.partialorder %v227_v9, 0.7853982  ;;  %v36_v20 = vmul.f32 %v30_v59, %v30_v59  ;;  %v1911_v59 = vld [vmem:[%s2543_s5 + $0x28] sm:$0xf] }
  0x2d   :  { %v48_v19 = vmul.f32 %v42_v5, %v42_v5  ;;  %vm58_vm3 = vcmp.eq.f32.partialorder %v1796_v13, inf  ;;  %v639_v31 = vand.u32 2147483647, %v1842_v17  ;;  %vm60_vm4 = vcmp.eq.f32.partialorder %v1796_v13, 0.0 }
  0x2e   :  { %v1499_v36 = vadd.s32 4294967294, %v295_v29  ;;  %v393_v45 = vshll.u32 %v1826_v39, 30  ;;  %v49_v29 = vmul.f32 %v43_v16, %v43_v16  ;;  %v643_v34 = vshrl.u32 %v642_v18, 23 }
  0x2f   :  { %v313_v38 = vsub.s32 4, %v1778_v63  ;;  %v61_v40 = vand.u32 2147483648, %v1796_v13  ;;  %v386_v42 = vadd.s32 %v1787_v4, %v1784_v3  ;;  %v68_v16 = vand.u32 2147483648, %v1824_v35 }
  0x30   :  { %vm1500_vm12 = vcmp.lt.s32.totalorder %v1499_v36, 0  ;;  %v1836_v51 = vsub.s32 %v390_v27, %v393_v45  ;;  %v37_v27 = vmul.f32 %v31_v2, %v31_v2  ;;  %vm1933_vm8 = vcmp.le.f32.partialorder %v330_v22, 0.7853982 }
  0x31   :  { %v298_v44 = vsel %vm1500_vm12, 0, %v1499_v36  ;;  %v1579_v52 = vpop.eup %1578  ;;  %vm65_vm9 = vcmp.eq.f32.partialorder %v1824_v35, inf  ;;  %vm67_vm11 = vcmp.eq.f32.partialorder %v1824_v35, 0.0 }
  0x32   :  { %v299_v47 = vsub.s32 32, %v298_v44  ;;  %v300_v48 = vshll.u32 %v291_v14, %v298_v44  ;;  %v303_v49 = vsub.s32 4294967266, %v298_v44  ;;  %v1581_v54 = vpop.eup %1580  ;;  %v396_v58 = vsub.s32 0, %v1836_v51 }
  0x33   :  { %v1583_v61 = vpop.eup %1582  ;;  %v129_v55 = vmul.f32 %v1579_v52, %v1776_v62  ;;  %v136_v56 = vmul.f32 %v1581_v54, %v1792_v8  ;;  %v1513_v44 = vadd.s32 4294967169, %v643_v34  ;;  %v646_v52 = vand.u32 8388607, %v639_v31 }
  0x34   :  { %v301_v53 = vshrl.u32 %v283_v43, %v299_v47  ;;  %v304_v7 = vadd.s32 127, %v303_v49  ;;  %v1502_v14 = vmin.u32 %v396_v58, %v1836_v51  ;;  %v57_v25 = vmul.f32 %v1583_v61, %v1796_v13 }
  0x35   :  { %v131_v9 = vsel %vm130_vm13, %v1776_v62, %v129_v55  ;;  %v138_v36 = vsel %vm137_vm15, %v1792_v8, %v136_v56  ;;  %v649_v58 = vadd.s32 1, %v1513_v44  ;;  %v314_v8 = vsel %vm229_vm0, %v313_v38, %v1778_v63 }
  0x36   :  { %v302_v0 = vor.u32 %v301_v53, %v300_v48  ;;  %v305_v1 = vshll.u32 %v304_v7, 23  ;;  %v398_v23 = vclz %v1502_v14  ;;  %v59_v43 = vsel %vm58_vm3, %v1796_v13, %v57_v25 }
  0x37   :  { %v1585_v45 = vpop.eup %1584  ;;  %v1891_v47 = vsel %vm132_vm14, %v133_v57, %v131_v9  ;;  %v1898_v3 = vsel %vm139_vm1, %v140_v60, %v138_v36  ;;  %v1904_v62 = vsel %vm60_vm4, %v61_v40, %v59_v43  ;;  %v1906_v57 = vadd.f32 %v48_v19, %v36_v20 }
  0x38   :  { %v306_v12 = vor.u32 4788187, %v305_v1  ;;  %v309_v15 = vcvt.s32.f32 %v302_v0  ;;  %v1503_v33 = vadd.s32 4294967294, %v398_v23  ;;  %v1916_v0 = vadd.f32 %v49_v29, %v37_v27 }
  0x39   :  { %v416_v1 = vsub.s32 4, %v1826_v39  ;;  %v1920_v13 = vmul.f32 %v1585_v45, %v1824_v35  ;;  %v647_v2 = vor.u32 8388608, %v646_v52  ;;  %vm650_vm7 = vcmp.gt.s32.totalorder %v649_v58, 0 }
  0x3a   :  { %v307_v21 = vand.u32 2147483647, %v306_v12  ;;  %vm1504_vm6 = vcmp.lt.s32.totalorder %v1503_v33, 0  ;;  %v745_v14 = vand.u32 2139095040, %v1911_v59  ;;  %v316_v63 = vsel %vm1869_vm2, 0, %v314_v8 }
  0x3b   :  { %v401_v49 = vsel %vm1504_vm6, 0, %v1503_v33  ;;  %1586 = vrsqrt.f32 %v1906_v57  ;;  %v651_v18 = vsel %vm650_vm7, %v649_v58, 0  ;;  %v417_v10 = vsel %vm332_vm5, %v416_v1, %v1826_v39 }
  0x3c   :  { %v310_v37 = vmul.f32 %v309_v15, %v307_v21  ;;  %v402_v53 = vsub.s32 32, %v401_v49  ;;  %v403_v7 = vshll.u32 %v1836_v51, %v401_v49  ;;  %v406_v54 = vsub.s32 4294967266, %v401_v49 }
  0x3d   :  { %1588 = vrsqrt.f32 %v1916_v0  ;;  %v653_v15 = vand.u32 31, %v651_v18  ;;  %v652_v23 = vshrl.u32 %v651_v18, 5  ;;  %v1940_v25 = vshll.u32 %v647_v2, 8 }
  0x3e   :  { %v311_v48 = vxor.u32 2147483648, %v310_v37  ;;  %v404_v51 = vshrl.u32 %v386_v42, %v402_v53  ;;  %v407_v61 = vadd.s32 127, %v406_v54  ;;  %v746_v29 = vshrl.u32 %v745_v14, 23 }
  0x3f   :  { %v654_v19 = vsub.s32 32, %v653_v15  ;;  %v656_v21 = vshll.u32 %v1627_v24, %v653_v15  ;;  %v659_v9 = vshll.u32 %v1628_v26, %v653_v15  ;;  %v662_v22 = vshll.u32 %v1629_v28, %v653_v15 }
  0x40   :  { %v312_v4 = vsel %vm229_vm0, %v311_v48, %v310_v37  ;;  %v405_v55 = vor.u32 %v404_v51, %v403_v7  ;;  %v408_v60 = vshll.u32 %v407_v61, 23  ;;  %v665_v33 = vshll.u32 %v1630_v30, %v653_v15 }
  0x41   :  { %v315_v5 = vsel %vm1869_vm2, %v1680_v6, %v312_v4  ;;  %v668_v34 = vshll.u32 %v1631_v32, %v653_v15  ;;  %v655_v39 = vshrl.u32 %v1627_v24, %v654_v19  ;;  %v657_v37 = vshrl.u32 %v1628_v26, %v654_v19 }
  0x42   :  { %v409_v56 = vor.u32 4788187, %v408_v60  ;;  %v412_v12 = vcvt.s32.f32 %v405_v55  ;;  %1590 = vcosq.f32 %v315_v5  ;;  %v660_v38 = vshrl.u32 %v1629_v28, %v654_v19 }
  0x43   :  { %v663_v40 = vshrl.u32 %v1630_v30, %v654_v19  ;;  %v666_v42 = vshrl.u32 %v1631_v32, %v654_v19  ;;  %v669_v43 = vshrl.u32 %v1632_v41, %v654_v19  ;;  %vm671_vm10 = vcmp.lt.s32.totalorder %v652_v23, 1 }
  0x44   :  { %v410_v27 = vand.u32 2147483647, %v409_v56  ;;  %v658_v45 = vor.u32 %v657_v37, %v656_v21  ;;  %v661_v48 = vor.u32 %v660_v38, %v659_v9  ;;  %v1517_v49 = vadd.s32 4294967169, %v746_v29 }
  0x45   :  { %v664_v52 = vor.u32 %v663_v40, %v662_v22  ;;  %v667_v53 = vor.u32 %v666_v42, %v665_v33  ;;  %v670_v7 = vor.u32 %v669_v43, %v668_v34  ;;  %vm673_vm12 = vcmp.lt.s32.totalorder %v652_v23, 3 }
  0x46   :  { %v413_v36 = vmul.f32 %v412_v12, %v410_v27  ;;  %1592 = vsinq.f32 %v315_v5  ;;  %vm672_vm13 = vcmp.lt.s32.totalorder %v652_v23, 2  ;;  %vm674_vm14 = vcmp.lt.s32.totalorder %v652_v23, 4 }
  0x47   :  { %v679_v54 = vsel %vm671_vm10, %v658_v45, %v661_v48  ;;  %v675_v4 = vsel %vm671_vm10, %v655_v39, %v658_v45  ;;  %v676_v8 = vsel %vm674_vm14, %v664_v52, 2102212464  ;;  %v680_v51 = vsel %vm674_vm14, %v667_v53, 920167782 }
  0x48   :  { %v414_v44 = vxor.u32 2147483648, %v413_v36  ;;  %v677_v61 = vsel %vm673_vm12, %v661_v48, %v676_v8  ;;  %v681_v1 = vsel %vm673_vm12, %v664_v52, %v680_v51  ;;  %v683_v2 = vsel %vm671_vm10, %v661_v48, %v664_v52  ;;  %v1587_v56 = vpop.eup %1586 }
  0x49   :  { %v684_v55 = vsel %vm674_vm14, %v670_v7, 1326507024  ;;  %v1962_v60 = vand.u32 3, %v316_v63  ;;  %v419_v5 = vsel %vm1933_vm8, 0, %v417_v10  ;;  %v682_v14 = vsel %vm672_vm13, %v679_v54, %v681_v1 }
  0x4a   :  { %v415_v58 = vsel %vm332_vm5, %v414_v44, %v413_v36  ;;  %v752_v18 = vadd.s32 1, %v1517_v49  ;;  %v685_v15 = vsel %vm673_vm12, %v667_v53, %v684_v55  ;;  %v1589_v21 = vpop.eup %1588  ;;  %v950_v29 = vadd.s32 3, %v316_v63 }
  0x4b   :  { %v418_v12 = vsel %vm1933_vm8, %v1687_v11, %v415_v58  ;;  %v1972_v27 = vmul.u32.u64.low %v1940_v25, %v682_v14  ;;  %v1973_v19 = vmul.u32.u64.high %v1940_v25, %v682_v14, %v1972_v27  ;;  %v66_v10 = vsel %vm65_vm9, %v1824_v35, %v1920_v13 }
  0x4c   :  { %v678_v9 = vsel %vm672_vm13, %v675_v4, %v677_v61  ;;  %v686_v22 = vsel %vm672_vm13, %v683_v2, %v685_v15  ;;  %v1054_v33 = vadd.s32 3, %v419_v5  ;;  %vm86_vm15 = vcmp.eq.f32.partialorder %v1906_v57, inf }
  0x4d   :  { %v1986_v34 = vmul.u32.u64.low %v1940_v25, %v686_v22  ;;  %v1987_v36 = vmul.u32.u64.high %v1940_v25, %v686_v22, %v1986_v34  ;;  %1594 = vcosq.f32 %v418_v12  ;;  %v85_v63 = vmul.f32 %v1587_v56, %v1906_v57 }
  0x4e   :  { %v742_v39 = vand.u32 2147483647, %v1911_v59  ;;  %vm753_vm0 = vcmp.gt.s32.totalorder %v752_v18, 0  ;;  %1596 = vsinq.f32 %v418_v12  ;;  %v694_v13 = vmul.u32 %v1940_v25, %v678_v9 }
  0x4f   :  { %v1982_v20 = vpop.eup %1590  ;;  %v697_v23 = vadd.s32 1, %v1973_v19  ;;  %v754_v37 = vsel %vm753_vm0, %v752_v18, 0  ;;  %vm325_vm1 = vcmp.eq.s32.totalorder %v1962_v60, 2  ;;  %v1994_v38 = vand.u32 3, %v950_v29 }
  0x50   :  { %v2000_v40 = vsel %vm67_vm11, %v68_v16, %v66_v10  ;;  %v756_v42 = vand.u32 31, %v754_v37  ;;  %v2002_v43 = vand.u32 3, %v419_v5  ;;  %vm88_vm2 = vcmp.eq.f32.partialorder %v1906_v57, 0.0 }
  0x51   :  { %v89_v25 = vand.u32 2147483648, %v1906_v57  ;;  %vm696_vm3 = vc.u32 %v1987_v36, %v1972_v27  ;;  %v2008_v44 = vand.u32 3, %v1054_v33  ;;  %v87_v45 = vsel %vm86_vm15, %v1906_v57, %v85_v63  ;;  %v102_v57 = vld [vmem:[%s2544_s2 + $0x20] sm:$0xf]  ;;  %v103_v63 = vld [vmem:[%s2544_s2 + $0x28] sm:$0xf] }
  0x52   :  { %v698_v35 = vsel %vm696_vm3, %v697_v23, %v1973_v19  ;;  %v757_v16 = vsub.s32 32, %v756_v42  ;;  %v749_v49 = vand.u32 8388607, %v742_v39  ;;  %v2016_v52 = vshrl.u32 %v754_v37, 5 }
  0x53   :  { %v699_v48 = vadd.s32 %v698_v35, %v694_v13  ;;  %v759_v53 = vshll.u32 %v1627_v24, %v756_v42  ;;  %v2019_v7 = vpop.eup %1592  ;;  %v762_v58 = vshll.u32 %v1628_v26, %v756_v42  ;;  %v765_v4 = vshll.u32 %v1629_v28, %v756_v42  ;;  %v114_v13 = vld [vmem:[%s2545_s3 + $0x20] sm:$0xf] }
  0x54   :  { %v760_v54 = vshrl.u32 %v1628_v26, %v757_v16  ;;  %v766_v8 = vshrl.u32 %v1630_v30, %v757_v16  ;;  %v763_v61 = vshrl.u32 %v1629_v28, %v757_v16  ;;  %v768_v1 = vshll.u32 %v1630_v30, %v756_v42 }
  0x55   :  { %v700_v51 = vadd.s32 536870912, %v699_v48  ;;  %v769_v2 = vshrl.u32 %v1631_v32, %v757_v16  ;;  %v326_v55 = vxor.u32 2147483648, %v1982_v20  ;;  %v96_v5 = vand.u32 2147483648, %v1916_v0 }
  0x56   :  { %v771_v14 = vshll.u32 %v1631_v32, %v756_v42  ;;  %v772_v18 = vshrl.u32 %v1632_v41, %v757_v16  ;;  %vm956_vm4 = vcmp.eq.s32.totalorder %v1994_v38, 2  ;;  %v2035_v56 = vsel %vm88_vm2, %v89_v25, %v87_v45 }
  0x57   :  { %v2038_v12 = vmul.f32 %v1589_v21, %v1916_v0  ;;  %v2040_v15 = vshrl.u32 %v700_v51, 30  ;;  %v750_v19 = vor.u32 8388608, %v749_v49  ;;  %vm322_vm5 = vcmp.eq.s32.totalorder %v1962_v60, 0  ;;  %v115_v49 = vld [vmem:[%s2545_s3 + $0x28] sm:$0xf] }
  0x58   :  { %v323_v29 = vxor.u32 2147483648, %v2019_v7  ;;  %vm953_vm6 = vcmp.eq.s32.totalorder %v1994_v38, 0  ;;  %v758_v10 = vshrl.u32 %v1627_v24, %v757_v16  ;;  %v761_v9 = vor.u32 %v760_v54, %v759_v53 }
  0x59   :  { %v767_v22 = vor.u32 %v766_v8, %v765_v4  ;;  %vm428_vm7 = vcmp.eq.s32.totalorder %v2002_v43, 2  ;;  %vm1060_vm8 = vcmp.eq.s32.totalorder %v2008_v44, 2  ;;  %v702_v21 = vshll.u32 %v2040_v15, 30 }
  0x5a   :  { %v764_v33 = vor.u32 %v763_v61, %v762_v58  ;;  %v770_v34 = vor.u32 %v769_v2, %v768_v1  ;;  %vm777_vm9 = vcmp.lt.s32.totalorder %v2016_v52, 4  ;;  %v2064_v23 = vsel %vm325_vm1, %v326_v55, %v2019_v7  ;;  %v1595_v25 = vpop.eup %1594 }
  0x5b   :  { %vm425_vm10 = vcmp.eq.s32.totalorder %v2002_v43, 0  ;;  %v773_v37 = vor.u32 %v772_v18, %v771_v14  ;;  %vm774_vm11 = vcmp.lt.s32.totalorder %v2016_v52, 1  ;;  %v779_v42 = vsel %vm777_vm9, %v767_v22, 2102212464  ;;  %v1597_v53 = vpop.eup %1596 }
  0x5c   :  { %vm1057_vm12 = vcmp.eq.s32.totalorder %v2008_v44, 0  ;;  %v2071_v45 = vsub.s32 %v699_v48, %v702_v21  ;;  %vm776_vm13 = vcmp.lt.s32.totalorder %v2016_v52, 3  ;;  %v2074_v35 = vshll.u32 %v750_v19, 8 }
  0x5d   :  { %v108_v16 = vmul.f32 %v102_v57, %v102_v57  ;;  %vm641_vm14 = vcmp.lt.s32.totalorder %v1842_v17, 0  ;;  %vm775_vm15 = vcmp.lt.s32.totalorder %v2016_v52, 2  ;;  %v778_v54 = vsel %vm774_vm11, %v758_v10, %v761_v9 }
  0x5e   :  { %v109_v58 = vmul.f32 %v103_v63, %v103_v63  ;;  %v120_v48 = vmul.f32 %v114_v13, %v114_v13  ;;  %v705_v4 = vsub.s32 0, %v2071_v45  ;;  %v780_v8 = vsel %vm776_vm13, %v764_v33, %v779_v42 }
  0x5f   :  { %v782_v51 = vsel %vm774_vm11, %v761_v9, %v764_v33  ;;  %v783_v61 = vsel %vm777_vm9, %v770_v34, 920167782  ;;  %v786_v2 = vsel %vm774_vm11, %v764_v33, %v767_v22  ;;  %v787_v14 = vsel %vm777_vm9, %v773_v37, 1326507024 }
  0x60   :  { %v784_v1 = vsel %vm776_vm13, %v767_v22, %v783_v61  ;;  %v121_v18 = vmul.f32 %v115_v49, %v115_v49  ;;  %vm424_vm2 = vcmp.lt.s32.totalorder %v2002_v43, 2  ;;  %v426_v19 = vxor.u32 2147483648, %v1597_v53 }
  0x61   :  { %v429_v10 = vxor.u32 2147483648, %v1595_v25  ;;  %vm952_vm3 = vcmp.lt.s32.totalorder %v1994_v38, 2  ;;  %vm2103_vm1 = vcmp.le.f32.partialorder %v639_v31, 0.7853982  ;;  %v1514_v22 = vmin.u32 %v705_v4, %v2071_v45 }
  0x62   :  { %v725_v57 = vsub.s32 4, %v2040_v15  ;;  %v781_v21 = vsel %vm775_vm15, %v778_v54, %v780_v8  ;;  %v785_v33 = vsel %vm775_vm15, %v782_v51, %v784_v1  ;;  %v788_v63 = vsel %vm776_vm13, %v770_v34, %v787_v14 }
  0x63   :  { %v2115_v13 = vadd.f32 %v120_v48, %v108_v16  ;;  %vm319_vm9 = vweird.f32 %v1680_v6  ;;  %vm95_vm11 = vcmp.eq.f32.partialorder %v1916_v0, 0.0  ;;  %v707_v31 = vclz %v1514_v22 }
  0x64   :  { %v789_v37 = vsel %vm775_vm15, %v786_v2, %v788_v63  ;;  %v2122_v42 = vmul.u32.u64.low %v2074_v35, %v785_v33  ;;  %v2123_v49 = vmul.u32.u64.high %v2074_v35, %v785_v33, %v2122_v42  ;;  %vm422_vm0 = vweird.f32 %v1687_v11 }
  0x65   :  { %v958_v34 = vsel %vm956_vm4, %v326_v55, %v2019_v7  ;;  %v2133_v16 = vmul.u32.u64.low %v2074_v35, %v789_v37  ;;  %v2134_v54 = vmul.u32.u64.high %v2074_v35, %v789_v37, %v2133_v16  ;;  %v2136_v48 = vadd.f32 %v121_v18, %v109_v58 }
  0x66   :  { %v324_v52 = vsel %vm322_vm5, %v1982_v20, %v323_v29  ;;  %v955_v4 = vsel %vm953_vm6, %v1982_v20, %v323_v29  ;;  %v1515_v8 = vadd.s32 4294967294, %v707_v31  ;;  %1598 = vrsqrt.f32 %v2115_v13 }
  0x67   :  { %v430_v55 = vsel %vm428_vm7, %v429_v10, %v1597_v53  ;;  %v1062_v58 = vsel %vm1060_vm8, %v429_v10, %v1597_v53  ;;  %v695_v51 = vadd.s32 %v1972_v27, %v1987_v36  ;;  %v797_v61 = vmul.u32 %v2074_v35, %v781_v21  ;;  %v2170_v27 = vld [vmem:[%s2543_s5 + $0x10] sm:$0xff] }
  0x68   :  { %v427_v7 = vsel %vm425_vm10, %v1595_v25, %v426_v19  ;;  %vm1516_vm4 = vcmp.lt.s32.totalorder %v1515_v8, 0  ;;  %v726_v20 = vsel %vm641_vm14, %v725_v57, %v2040_v15  ;;  %v800_v29 = vadd.s32 1, %v2123_v49 }
  0x69   :  { %v1059_v1 = vsel %vm1057_vm12, %v1595_v25, %v426_v19  ;;  %v710_v2 = vsel %vm1516_vm4, 0, %v1515_v8  ;;  %vm799_vm5 = vc.u32 %v2134_v54, %v2122_v42  ;;  %1600 = vrsqrt.f32 %v2136_v48 }
  0x6a   :  { %v711_v36 = vsub.s32 32, %v710_v2  ;;  %v712_v35 = vshll.u32 %v2071_v45, %v710_v2  ;;  %v715_v15 = vsub.s32 4294967266, %v710_v2  ;;  %v801_v53 = vsel %vm799_vm5, %v800_v29, %v2123_v49 }
  0x6b   :  { %vm2555_vm6 = vcmp.eq.f32.partialorder %v1916_v0, inf  ;;  %v728_v14 = vsel %vm2103_vm1, 0, %v726_v20  ;;  %vm744_vm7 = vcmp.lt.s32.totalorder %v1911_v59, 0  ;;  %v802_v18 = vadd.s32 %v801_v53, %v797_v61 }
  0x6c   :  { %v94_v25 = vsel %vm2555_vm6, %v1916_v0, %v2038_v12  ;;  %vm2556_vm8 = vcmp.lt.s32.totalorder %v1962_v60, 2  ;;  %v713_v10 = vshrl.u32 %v695_v51, %v711_v36  ;;  %v716_v45 = vadd.s32 127, %v715_v15  ;;  %v2219_v51 = vld [vmem:[%s2543_s5 + $0x18] sm:$0xff] }
  0x6d   :  { %v328_v19 = vsel %vm2556_vm8, %v324_v52, %v2064_v23  ;;  %v436_v22 = vand.u32 2139095040, %v2170_v27  ;;  %v431_v57 = vsel %vm424_vm2, %v427_v7, %v430_v55  ;;  %v959_v12 = vsel %vm952_vm3, %v955_v4, %v958_v34 }
  0x6e   :  { %vm2557_vm10 = vcmp.lt.s32.totalorder %v2008_v44, 2  ;;  %v803_v33 = vadd.s32 536870912, %v802_v18  ;;  %v714_v63 = vor.u32 %v713_v10, %v712_v35  ;;  %v717_v31 = vshll.u32 %v716_v45, 23 }
  0x6f   :  { %v1063_v21 = vsel %vm2557_vm10, %v1059_v1, %v1062_v58  ;;  %v1366_v37 = vadd.s32 3, %v728_v14  ;;  %v437_v49 = vshrl.u32 %v436_v22, 23  ;;  %v329_v60 = vsel %vm319_vm9, nan, %v328_v19 }
  0x70   :  { %v2197_v43 = vsel %vm95_vm11, %v96_v5, %v94_v25  ;;  %vm2201_vm12 = vcmp.le.f32.partialorder %v742_v39, 0.7853982  ;;  %v804_v44 = vshrl.u32 %v803_v33, 30  ;;  %v432_v23 = vsel %vm422_vm0, nan, %v431_v57 }
  0x71   :  { %v960_v34 = vsel %vm319_vm9, nan, %v959_v12  ;;  %v718_v16 = vor.u32 4788187, %v717_v31  ;;  %v721_v52 = vcvt.s32.f32 %v714_v63  ;;  %v1064_v0 = vsel %vm422_vm0, nan, %v1063_v21 }
  0x72   :  { %v805_v5 = vshll.u32 %v804_v44, 30  ;;  %v828_v4 = vsub.s32 4, %v804_v44  ;;  %v433_v8 = vand.u32 2147483647, %v2170_v27  ;;  %v2212_v55 = vand.u32 3, %v728_v14 }
  0x73   :  { %v719_v39 = vand.u32 2147483647, %v718_v16  ;;  %v2214_v58 = vand.u32 3, %v1366_v37  ;;  %v1505_v6 = vadd.s32 4294967169, %v437_v49  ;;  %v1599_v61 = vpop.eup %1598  ;;  %vm158_vm13 = vcmp.eq.f32.partialorder %v2115_v13, inf }
  0x74   :  { %v2221_v7 = vsub.s32 %v802_v18, %v805_v5  ;;  %vm160_vm15 = vcmp.eq.f32.partialorder %v2115_v13, 0.0  ;;  %v161_v11 = vand.u32 2147483648, %v2115_v13  ;;  %v829_v29 = vsel %vm744_vm7, %v828_v4, %v804_v44 }
  0x75   :  { %v722_v20 = vmul.f32 %v721_v52, %v719_v39  ;;  %v157_v1 = vmul.f32 %v1599_v61, %v2115_v13  ;;  %vm165_vm0 = vcmp.eq.f32.partialorder %v2136_v48, inf  ;;  %v798_v36 = vadd.s32 %v2122_v42, %v2134_v54 }
  0x76   :  { %v808_v35 = vsub.s32 0, %v2221_v7  ;;  %v440_v15 = vand.u32 8388607, %v433_v8  ;;  %v539_v53 = vand.u32 2139095040, %v2219_v51  ;;  %v1601_v25 = vpop.eup %1600  ;;  %v443_v10 = vadd.s32 1, %v1505_v6 }
  0x77   :  { %v723_v19 = vxor.u32 2147483648, %v722_v20  ;;  %v831_v42 = vsel %vm2201_vm12, 0, %v829_v29  ;;  %vm167_vm2 = vcmp.eq.f32.partialorder %v2136_v48, 0.0  ;;  %v168_v54 = vand.u32 2147483648, %v2136_v48 }
  0x78   :  { %v1518_v22 = vmin.u32 %v808_v35, %v2221_v7  ;;  %v441_v31 = vor.u32 8388608, %v440_v15  ;;  %v540_v37 = vshrl.u32 %v539_v53, 23  ;;  %vm444_vm3 = vcmp.gt.s32.totalorder %v443_v10, 0 }
  0x79   :  { %v1470_v16 = vadd.s32 3, %v831_v42  ;;  %v445_v61 = vsel %vm444_vm3, %v443_v10, 0  ;;  %vm1372_vm9 = vcmp.eq.s32.totalorder %v2214_v58, 2  ;;  %vm734_vm11 = vcmp.eq.s32.totalorder %v2212_v55, 0 }
  0x7a   :  { %v810_v63 = vclz %v1518_v22  ;;  %v447_v15 = vand.u32 31, %v445_v61  ;;  %v1509_v53 = vadd.s32 4294967169, %v540_v37  ;;  %vm1369_vm4 = vcmp.eq.s32.totalorder %v2214_v58, 0 }
  0x7b   :  { %v2286_v35 = vand.u32 3, %v1470_v16  ;;  %vm733_vm5 = vcmp.lt.s32.totalorder %v2212_v55, 2  ;;  %vm1368_vm6 = vcmp.lt.s32.totalorder %v2214_v58, 2  ;;  %vm731_vm8 = vweird.f32 %v1842_v17 }
  0x7c   :  { %v1519_v44 = vadd.s32 4294967294, %v810_v63  ;;  %v450_v10 = vshll.u32 %v1627_v24, %v447_v15 }
  0x7d   :  { %v197_v2 = vpop.permute.xlu1 %196 }
  0x7e   :  { %v209_v14 = vmul.f32 %v197_v2, %v1891_v47  ;;  %v210_v18 = vmul.f32 %v197_v2, %v1898_v3  ;;  %v724_v47 = vsel %vm641_vm14, %v723_v19, %v722_v20  ;;  %v159_v3 = vsel %vm158_vm13, %v2115_v13, %v157_v1 }
  0x7f   :  { %v176_v45 = vpop.permute.xlu0 %175  ;;  %v727_v33 = vsel %vm2103_vm1, %v1842_v17, %v724_v47  ;;  %v162_v52 = vsel %vm160_vm15, %v161_v11, %v159_v3  ;;  %vm1520_vm14 = vcmp.lt.s32.totalorder %v1519_v44, 0  ;;  %v536_v20 = vand.u32 2147483647, %v2219_v51 }
  0x80   :  { %v188_v57 = vmul.f32 %v176_v45, %v1904_v62  ;;  %v189_v12 = vmul.f32 %v176_v45, %v2000_v40  ;;  %v164_v40 = vmul.f32 %v1601_v25, %v2136_v48  ;;  %1602 = vcosq.f32 %v727_v33 }
  0x81   :  { %v2250_v21 = vpop.permute.xlu1 %185  ;;  %1604 = vsinq.f32 %v727_v33  ;;  %v813_v13 = vsel %vm1520_vm14, 0, %v1519_v44  ;;  %vm737_vm1 = vcmp.eq.s32.totalorder %v2212_v55, 2  ;;  %v2283_v2 = vand.u32 3, %v831_v42 }
  0x82   :  { %v215_v49 = vadd.f32 %v209_v14, %v188_v57  ;;  %v216_v62 = vadd.f32 %v210_v18, %v189_v12  ;;  %v814_v11 = vsub.s32 32, %v813_v13  ;;  %v815_v29 = vshll.u32 %v2221_v7, %v813_v13 }
  0x83   :  { %v818_v1 = vsub.s32 4294967266, %v813_v13  ;;  %v446_v7 = vshrl.u32 %v445_v61, 5  ;;  %v448_v19 = vsub.s32 32, %v447_v15  ;;  %v453_v45 = vshll.u32 %v1628_v26, %v447_v15 }
  0x84   :  { %v845_v5 = vmul.f32 %v329_v60, %v215_v49  ;;  %v846_v4 = vmul.f32 %v432_v23, %v216_v62  ;;  %v1481_v39 = vmul.f32 %v960_v34, %v215_v49  ;;  %v1482_v6 = vmul.f32 %v1064_v0, %v216_v62 }
  0x85   :  { %v2258_v9 = vpop.permute.xlu1 %206  ;;  %v166_v60 = vsel %vm165_vm0, %v2136_v48, %v164_v40  ;;  %v2277_v34 = vshll.u32 %v441_v31, 8  ;;  %v192_v0 = vmul.f32 %v2250_v21, %v2035_v56  ;;  %v816_v25 = vshrl.u32 %v798_v36, %v814_v11 }
  0x86   :  { %851 = vst [vmem:[%s2548_s6] sm:$0xff] %v845_v5  ;;  %852 = vst [vmem:[%s2548_s6 + $0x8] sm:$0xff] %v846_v4  ;;  %v213_v23 = vmul.f32 %v2258_v9, %v162_v52  ;;  %v819_v14 = vadd.s32 127, %v818_v1  ;;  %v2290_v18 = vsel %vm167_vm2, %v168_v54, %v166_v60  ;;  %v456_v48 = vshll.u32 %v1629_v28, %v447_v15 }
  0x87   :  { %1487 = vst [vmem:[%s2548_s6 + $0x10] sm:$0xff] %v1481_v39  ;;  %1488 = vst [vmem:[%s2548_s6 + $0x18] sm:$0xff] %v1482_v6  ;;  %v817_v36 = vor.u32 %v816_v25, %v815_v29  ;;  %v459_v42 = vshll.u32 %v1630_v30, %v447_v15  ;;  %v449_v54 = vshrl.u32 %v1627_v24, %v448_v19  ;;  %vm465_vm10 = vcmp.lt.s32.totalorder %v446_v7, 1 }
  0x88   :  { %v2292_v56 = vadd.f32 %v213_v23, %v192_v0  ;;  %v820_v22 = vshll.u32 %v819_v14, 23  ;;  %v451_v57 = vshrl.u32 %v1628_v26, %v448_v19  ;;  %v454_v12 = vshrl.u32 %v1629_v28, %v448_v19 }
  0x89   :  { %v457_v47 = vshrl.u32 %v1630_v30, %v448_v19  ;;  %v824_v33 = vcvt.s32.f32 %v817_v36  ;;  %v460_v63 = vshrl.u32 %v1631_v32, %v448_v19  ;;  %v462_v31 = vshll.u32 %v1631_v32, %v447_v15 }
  0x8a   :  { %v821_v3 = vor.u32 4788187, %v820_v22  ;;  %v452_v37 = vor.u32 %v451_v57, %v450_v10  ;;  %v455_v49 = vor.u32 %v454_v12, %v453_v45  ;;  %v463_v40 = vshrl.u32 %v1632_v41, %v448_v19 }
  0x8b   :  { %v458_v62 = vor.u32 %v457_v47, %v456_v48  ;;  %v461_v16 = vor.u32 %v460_v63, %v459_v42  ;;  %v546_v52 = vadd.s32 1, %v1509_v53  ;;  %vm466_vm13 = vcmp.lt.s32.totalorder %v446_v7, 2 }
  0x8c   :  { %v822_v44 = vand.u32 2147483647, %v821_v3  ;;  %v464_v4 = vor.u32 %v463_v40, %v462_v31  ;;  %vm467_vm15 = vcmp.lt.s32.totalorder %v446_v7, 3  ;;  %vm468_vm0 = vcmp.lt.s32.totalorder %v446_v7, 4 }
  0x8d   :  { %v1603_v5 = vpop.eup %1602  ;;  %v469_v61 = vsel %vm465_vm10, %v449_v54, %v452_v37  ;;  %v470_v13 = vsel %vm468_vm0, %v458_v62, 2102212464  ;;  %v473_v23 = vsel %vm465_vm10, %v452_v37, %v455_v49  ;;  %v474_v0 = vsel %vm468_vm0, %v461_v16, 920167782 }
  0x8e   :  { %v738_v39 = vxor.u32 2147483648, %v1603_v5  ;;  %v825_v6 = vmul.f32 %v824_v33, %v822_v44  ;;  %v1605_v60 = vpop.eup %1604  ;;  %v477_v11 = vsel %vm465_vm10, %v455_v49, %v458_v62  ;;  %v478_v29 = vsel %vm468_vm0, %v464_v4, 1326507024 }
  0x8f   :  { %v735_v1 = vxor.u32 2147483648, %v1605_v60  ;;  %v471_v14 = vsel %vm467_vm15, %v455_v49, %v470_v13  ;;  %v475_v19 = vsel %vm467_vm15, %v458_v62, %v474_v0  ;;  %v479_v10 = vsel %vm467_vm15, %v461_v16, %v478_v29 }
  0x90   :  { %v739_v15 = vsel %vm737_vm1, %v738_v39, %v1605_v60  ;;  %v826_v25 = vxor.u32 2147483648, %v825_v6  ;;  %v1374_v53 = vsel %vm1372_vm9, %v738_v39, %v1605_v60  ;;  %vm547_vm2 = vcmp.gt.s32.totalorder %v546_v52, 0 }
  0x91   :  { %v736_v45 = vsel %vm734_vm11, %v1603_v5, %v735_v1  ;;  %v1371_v22 = vsel %vm1369_vm4, %v1603_v5, %v735_v1  ;;  %v476_v48 = vsel %vm466_vm13, %v473_v23, %v475_v19  ;;  %v480_v12 = vsel %vm466_vm13, %v477_v11, %v479_v10 }
  0x92   :  { %v827_v36 = vsel %vm744_vm7, %v826_v25, %v825_v6  ;;  %v740_v42 = vsel %vm733_vm5, %v736_v45, %v739_v15  ;;  %v1375_v57 = vsel %vm1368_vm6, %v1371_v22, %v1374_v53  ;;  %v472_v33 = vsel %vm466_vm13, %v469_v61, %v471_v14 }
  0x93   :  { %v830_v54 = vsel %vm2201_vm12, %v1911_v59, %v827_v36  ;;  %v741_v47 = vsel %vm731_vm8, nan, %v740_v42  ;;  %v1376_v3 = vsel %vm731_vm8, nan, %v1375_v57  ;;  %v548_v63 = vsel %vm547_vm2, %v546_v52, 0 }
  0x94   :  { %1606 = vcosq.f32 %v830_v54  ;;  %v849_v55 = vmul.f32 %v741_v47, %v2292_v56  ;;  %v1485_v38 = vmul.f32 %v1376_v3, %v2292_v56  ;;  %v543_v17 = vand.u32 8388607, %v536_v20 }
  0x95   :  { %1608 = vsinq.f32 %v830_v54  ;;  %v2341_v58 = vmul.u32.u64.low %v2277_v34, %v480_v12  ;;  %v2342_v31 = vmul.u32.u64.high %v2277_v34, %v480_v12, %v2341_v58  ;;  %v550_v56 = vand.u32 31, %v548_v63 }
  0x96   :  { %v2345_v37 = vmul.u32.u64.low %v2277_v34, %v476_v48  ;;  %v2346_v49 = vmul.u32.u64.high %v2277_v34, %v476_v48, %v2345_v37  ;;  %855 = vst [vmem:[%s2548_s6 + $0x40] sm:$0xf] %v849_v55  ;;  %1491 = vst [vmem:[%s2548_s6 + $0x50] sm:$0xf] %v1485_v38  ;;  %v193_v7 = vmul.f32 %v2250_v21, %v2197_v43  ;;  %v214_v62 = vmul.f32 %v2258_v9, %v2290_v18 }
  0x97   :  { %v488_v40 = vmul.u32 %v2277_v34, %v472_v33  ;;  %vm840_vm7 = vcmp.eq.s32.totalorder %v2283_v2, 2  ;;  %vm1476_vm12 = vcmp.eq.s32.totalorder %v2286_v35, 2  ;;  %v2364_v44 = vshrl.u32 %v548_v63, 5 }
  0x98   :  { %v551_v16 = vsub.s32 32, %v550_v56  ;;  %v556_v52 = vshll.u32 %v1628_v26, %v550_v56  ;;  %v559_v5 = vshll.u32 %v1629_v28, %v550_v56  ;;  %vm837_vm3 = vcmp.eq.s32.totalorder %v2283_v2, 0 }
  0x99   :  { %vm1473_vm14 = vcmp.eq.s32.totalorder %v2286_v35, 0  ;;  %vm490_vm1 = vc.u32 %v2342_v31, %v2345_v37  ;;  %v491_v43 = vadd.s32 1, %v2346_v49  ;;  %v553_v21 = vshll.u32 %v1627_v24, %v550_v56 }
  0x9a   :  { %v562_v9 = vshll.u32 %v1630_v30, %v550_v56  ;;  %vm836_vm9 = vcmp.lt.s32.totalorder %v2283_v2, 2  ;;  %vm1472_vm11 = vcmp.lt.s32.totalorder %v2286_v35, 2  ;;  %v544_v34 = vor.u32 8388608, %v543_v17  ;;  %v112_v35 = vld [vmem:[%s2545_s3 + $0x10] sm:$0xff] }
  0x9b   :  { %v554_v18 = vshrl.u32 %v1628_v26, %v551_v16  ;;  %v557_v4 = vshrl.u32 %v1629_v28, %v551_v16  ;;  %v560_v39 = vshrl.u32 %v1630_v30, %v551_v16  ;;  %vm834_vm4 = vweird.f32 %v1911_v59 }
  0x9c   :  { %v492_v6 = vsel %vm490_vm1, %v491_v43, %v2346_v49  ;;  %v563_v61 = vshrl.u32 %v1631_v32, %v551_v16  ;;  %v565_v13 = vshll.u32 %v1631_v32, %v550_v56  ;;  %v566_v60 = vshrl.u32 %v1632_v41, %v551_v16 }
  0x9d   :  { %v493_v23 = vadd.s32 %v492_v6, %v488_v40  ;;  %v552_v0 = vshrl.u32 %v1627_v24, %v551_v16  ;;  %v558_v11 = vor.u32 %v557_v4, %v556_v52  ;;  %v561_v29 = vor.u32 %v560_v39, %v559_v5  ;;  %v100_v5 = vld [vmem:[%s2544_s2 + $0x10] sm:$0xff] }
  0x9e   :  { %v555_v26 = vor.u32 %v554_v18, %v553_v21  ;;  %v564_v1 = vor.u32 %v563_v61, %v562_v9  ;;  %v567_v28 = vor.u32 %v566_v60, %v565_v13  ;;  %vm568_vm5 = vcmp.lt.s32.totalorder %v2364_v44, 1 }
  0x9f   :  { %v494_v30 = vadd.s32 536870912, %v493_v23  ;;  %vm570_vm6 = vcmp.lt.s32.totalorder %v2364_v44, 3  ;;  %vm571_vm8 = vcmp.lt.s32.totalorder %v2364_v44, 4  ;;  %v584_v15 = vshll.u32 %v544_v34, 8 }
  0xa0   :  { %vm569_vm10 = vcmp.lt.s32.totalorder %v2364_v44, 2  ;;  %v573_v32 = vsel %vm571_vm8, %v561_v29, 2102212464  ;;  %v577_v41 = vsel %vm571_vm8, %v564_v1, 920167782  ;;  %v580_v24 = vsel %vm568_vm5, %v558_v11, %v561_v29 }
  0xa1   :  { %v1607_v25 = vpop.eup %1606  ;;  %v220_v53 = vadd.f32 %v214_v62, %v193_v7  ;;  %v2392_v14 = vshrl.u32 %v494_v30, 30  ;;  %v572_v19 = vsel %vm568_vm5, %v552_v0, %v555_v26  ;;  %v581_v10 = vsel %vm571_vm8, %v567_v28, 1326507024 }
  0xa2   :  { %v1609_v45 = vpop.eup %1608  ;;  %v841_v36 = vxor.u32 2147483648, %v1607_v25  ;;  %v576_v22 = vsel %vm568_vm5, %v555_v26, %v558_v11  ;;  %v578_v48 = vsel %vm570_vm6, %v561_v29, %v577_v41  ;;  %v582_v42 = vsel %vm570_vm6, %v564_v1, %v581_v10  ;;  %v101_v10 = vld [vmem:[%s2544_s2 + $0x18] sm:$0xff] }
  0xa3   :  { %v838_v54 = vxor.u32 2147483648, %v1609_v45  ;;  %v496_v57 = vshll.u32 %v2392_v14, 30  ;;  %v574_v12 = vsel %vm570_vm6, %v558_v11, %v573_v32  ;;  %v583_v47 = vsel %vm569_vm10, %v580_v24, %v582_v42 }
  0xa4   :  { %v842_v3 = vsel %vm840_vm7, %v841_v36, %v1609_v45  ;;  %v1478_v33 = vsel %vm1476_vm12, %v841_v36, %v1609_v45  ;;  %v2411_v55 = vmul.u32.u64.low %v584_v15, %v583_v47  ;;  %v2412_v38 = vmul.u32.u64.high %v584_v15, %v583_v47, %v2411_v55  ;;  %v113_v45 = vld [vmem:[%s2545_s3 + $0x18] sm:$0xff] }
  0xa5   :  { %v839_v63 = vsel %vm837_vm3, %v1607_v25, %v838_v54  ;;  %v1475_v58 = vsel %vm1473_vm14, %v1607_v25, %v838_v54  ;;  %v497_v49 = vsub.s32 %v493_v23, %v496_v57  ;;  %v579_v17 = vsel %vm569_vm10, %v576_v22, %v578_v48 }
  0xa6   :  { %v843_v56 = vsel %vm836_vm9, %v839_v63, %v842_v3  ;;  %v1479_v7 = vsel %vm1472_vm11, %v1475_v58, %v1478_v33  ;;  %v575_v52 = vsel %vm569_vm10, %v572_v19, %v574_v12  ;;  %v106_v59 = vmul.f32 %v100_v5, %v100_v5 }
  0xa7   :  { %v844_v62 = vsel %vm834_vm4, nan, %v843_v56  ;;  %v1480_v40 = vsel %vm834_vm4, nan, %v1479_v7  ;;  %v499_v16 = vsub.s32 0, %v497_v49  ;;  %v591_v18 = vmul.u32 %v584_v15, %v575_v52  ;;  %v2481_v52 = vpop.permute.xlu0 %180 }
  0xa8   :  { %v850_v43 = vmul.f32 %v844_v62, %v220_v53  ;;  %v1486_v2 = vmul.f32 %v1480_v40, %v220_v53  ;;  %v2433_v21 = vmul.u32.u64.low %v584_v15, %v579_v17  ;;  %v2434_v9 = vmul.u32.u64.high %v584_v15, %v579_v17, %v2433_v21 }
  0xa9   :  { %v1506_v34 = vmin.u32 %v499_v16, %v497_v49  ;;  %v118_v4 = vmul.f32 %v112_v35, %v112_v35  ;;  %v489_v13 = vadd.s32 %v2345_v37, %v2342_v31  ;;  %v519_v22 = vsub.s32 4, %v2392_v14 }
  0xaa   :  { %856 = vst [vmem:[%s2548_s6 + $0x48] sm:$0xf] %v850_v43  ;;  %1492 = vst [vmem:[%s2548_s6 + $0x58] sm:$0xf] %v1486_v2  ;;  %vm593_vm13 = vc.u32 %v2412_v38, %v2433_v21  ;;  %v594_v39 = vadd.s32 1, %v2434_v9  ;;  %vm435_vm2 = vcmp.lt.s32.totalorder %v2170_v27, 0  ;;  %v107_v12 = vmul.f32 %v101_v10, %v101_v10 }
  0xab   :  { %v501_v44 = vclz %v1506_v34  ;;  %v2450_v23 = vadd.f32 %v118_v4, %v106_v59  ;;  %vm2466_vm0 = vcmp.le.f32.partialorder %v433_v8, 0.7853982  ;;  %v119_v47 = vmul.f32 %v113_v45, %v113_v45 }
  0xac   :  { %v595_v61 = vsel %vm593_vm13, %v594_v39, %v2434_v9  ;;  %v520_v33 = vsel %vm435_vm2, %v519_v22, %v2392_v14  ;;  %v592_v8 = vadd.s32 %v2433_v21, %v2412_v38  ;;  %vm72_vm3 = vcmp.eq.f32.partialorder %v1832_v46, inf }
  0xad   :  { %v1507_v6 = vadd.s32 4294967294, %v501_v44  ;;  %v596_v60 = vadd.s32 %v595_v61, %v591_v18  ;;  %1610 = vrsqrt.f32 %v2450_v23  ;;  %v2476_v17 = vadd.f32 %v119_v47, %v107_v12  ;;  %v202_v61 = vpop.permute.xlu0 %201 }
  0xae   :  { %1612 = vrsqrt.f32 %v1832_v46  ;;  %v522_v56 = vsel %vm2466_vm0, 0, %v520_v33  ;;  %vm144_vm12 = vcmp.eq.f32.partialorder %v2450_v23, inf  ;;  %v75_v2 = vand.u32 2147483648, %v1832_v46 }
  0xaf   :  { %vm1508_vm15 = vcmp.lt.s32.totalorder %v1507_v6, 0  ;;  %v597_v1 = vadd.s32 536870912, %v596_v60  ;;  %v1158_v21 = vadd.s32 3, %v522_v56  ;;  %v147_v9 = vand.u32 2147483648, %v2450_v23 }
  0xb0   :  { %v504_v0 = vsel %vm1508_vm15, 0, %v1507_v6  ;;  %vm146_vm14 = vcmp.eq.f32.partialorder %v2450_v23, 0.0  ;;  %vm74_vm1 = vcmp.eq.f32.partialorder %v1832_v46, 0.0  ;;  %v526_v39 = vand.u32 3, %v522_v56 }
  0xb1   :  { %v505_v11 = vsub.s32 32, %v504_v0  ;;  %v506_v29 = vshll.u32 %v497_v49, %v504_v0  ;;  %v509_v26 = vsub.s32 4294967266, %v504_v0  ;;  %v2452_v15 = vshrl.u32 %v597_v1, 30 }
  0xb2   :  { %v1159_v6 = vand.u32 3, %v1158_v21  ;;  %vm2496_vm9 = vcmp.le.f32.partialorder %v536_v20, 0.7853982  ;;  %vm538_vm11 = vcmp.lt.s32.totalorder %v2219_v51, 0  ;;  %vm531_vm4 = vcmp.eq.s32.totalorder %v526_v39, 2 }
  0xb3   :  { %v507_v28 = vshrl.u32 %v489_v13, %v505_v11  ;;  %v510_v30 = vadd.s32 127, %v509_v26  ;;  %v599_v31 = vshll.u32 %v2452_v15, 30  ;;  %v622_v1 = vsub.s32 4, %v2452_v15 }
  0xb4   :  { %vm1164_vm5 = vcmp.eq.s32.totalorder %v1159_v6, 2  ;;  %vm528_vm6 = vcmp.eq.s32.totalorder %v526_v39, 0  ;;  %vm1161_vm8 = vcmp.eq.s32.totalorder %v1159_v6, 0  ;;  %vm525_vm10 = vweird.f32 %v2170_v27 }
  0xb5   :  { %v508_v32 = vor.u32 %v507_v28, %v506_v29  ;;  %v511_v41 = vshll.u32 %v510_v30, 23  ;;  %v600_v25 = vsub.s32 %v596_v60, %v599_v31  ;;  %vm527_vm13 = vcmp.lt.s32.totalorder %v526_v39, 2 }
  0xb6   :  { %vm1160_vm15 = vcmp.lt.s32.totalorder %v1159_v6, 2  ;;  %v154_v33 = vand.u32 2147483648, %v2476_v17 }
  0xb7   :  { %v512_v37 = vor.u32 4788187, %v511_v41  ;;  %v515_v24 = vcvt.s32.f32 %v508_v32  ;;  %v602_v19 = vsub.s32 0, %v600_v25 }
  0xb9   :  { %v513_v53 = vand.u32 2147483647, %v512_v37  ;;  %v1510_v48 = vmin.u32 %v602_v19, %v600_v25  ;;  %v623_v19 = vsel %vm538_vm11, %v622_v1, %v2452_v15 }
  0xba   :  { %v1611_v63 = vpop.eup %1610 }
  0xbb   :  { %v516_v36 = vmul.f32 %v515_v24, %v513_v53  ;;  %v604_v57 = vclz %v1510_v48  ;;  %v1613_v49 = vpop.eup %1612  ;;  %v143_v16 = vmul.f32 %v1611_v63, %v2450_v23  ;;  %v82_v63 = vand.u32 2147483648, %v1834_v50 }
  0xbc   :  { %v71_v5 = vmul.f32 %v1613_v49, %v1832_v46 }
  0xbd   :  { %v517_v54 = vxor.u32 2147483648, %v516_v36  ;;  %v1511_v55 = vadd.s32 4294967294, %v604_v57  ;;  %v145_v59 = vsel %vm144_vm12, %v2450_v23, %v143_v16  ;;  %v625_v57 = vsel %vm2496_vm9, 0, %v623_v19 }
  0xbe   :  { %v73_v44 = vsel %vm72_vm3, %v1832_v46, %v71_v5  ;;  %v148_v13 = vsel %vm146_vm14, %v147_v9, %v145_v59  ;;  %vm81_vm12 = vcmp.eq.f32.partialorder %v1834_v50, 0.0  ;;  %v629_v49 = vand.u32 3, %v625_v57 }
  0xbf   :  { %v518_v3 = vsel %vm435_vm2, %v517_v54, %v516_v36  ;;  %vm1512_vm7 = vcmp.lt.s32.totalorder %v1511_v55, 0  ;;  %v76_v60 = vsel %vm74_vm1, %v75_v2, %v73_v44  ;;  %v211_v29 = vmul.f32 %v202_v61, %v148_v13 }
  0xc0   :  { %v521_v58 = vsel %vm2466_vm0, %v2170_v27, %v518_v3  ;;  %v607_v7 = vsel %vm1512_vm7, 0, %v1511_v55  ;;  %v190_v46 = vmul.f32 %v2481_v52, %v76_v60  ;;  %vm151_vm0 = vcmp.eq.f32.partialorder %v2476_v17, inf }
  0xc1   :  { %1614 = vcosq.f32 %v521_v58  ;;  %v608_v62 = vsub.s32 32, %v607_v7  ;;  %v609_v14 = vshll.u32 %v600_v25, %v607_v7  ;;  %v612_v40 = vsub.s32 4294967266, %v607_v7 }
  0xc2   :  { %1616 = vsinq.f32 %v521_v58  ;;  %v217_v24 = vadd.f32 %v211_v29, %v190_v46  ;;  %vm79_vm2 = vcmp.eq.f32.partialorder %v1834_v50, inf  ;;  %v1262_v27 = vadd.s32 3, %v625_v57 }
  0xc3   :  { %v610_v38 = vshrl.u32 %v592_v8, %v608_v62  ;;  %v613_v43 = vadd.s32 127, %v612_v40  ;;  %1618 = vrsqrt.f32 %v2476_v17  ;;  %vm153_vm7 = vcmp.eq.f32.partialorder %v2476_v17, 0.0 }
  0xc4   :  { %1620 = vrsqrt.f32 %v1834_v50  ;;  %v1263_v8 = vand.u32 3, %v1262_v27  ;;  %vm634_vm3 = vcmp.eq.s32.totalorder %v629_v49, 2  ;;  %vm631_vm1 = vcmp.eq.s32.totalorder %v629_v49, 0 }
  0xc5   :  { %v611_v35 = vor.u32 %v610_v38, %v609_v14  ;;  %v614_v34 = vshll.u32 %v613_v43, 23 }
  0xc6   :  { %vm1268_vm14 = vcmp.eq.s32.totalorder %v1263_v8, 2 }
  0xc7   :  { %v615_v18 = vor.u32 4788187, %v614_v34  ;;  %v618_v4 = vcvt.s32.f32 %v611_v35 }
  0xc9   :  { %v616_v0 = vand.u32 2147483647, %v615_v18 }
  0xcb   :  { %v619_v23 = vmul.f32 %v618_v4, %v616_v0 }
  0xcd   :  { %v620_v32 = vxor.u32 2147483648, %v619_v23 }
  0xce   :  { %v1615_v26 = vpop.eup %1614 }
  0xcf   :  { %v1617_v28 = vpop.eup %1616  ;;  %v532_v30 = vxor.u32 2147483648, %v1615_v26  ;;  %v621_v31 = vsel %vm538_vm11, %v620_v32, %v619_v23  ;;  %vm630_vm11 = vcmp.lt.s32.totalorder %v629_v49, 2 }
  0xd0   :  { %v529_v20 = vxor.u32 2147483648, %v1617_v28  ;;  %v1619_v25 = vpop.eup %1618  ;;  %v624_v10 = vsel %vm2496_vm9, %v2219_v51, %v621_v31  ;;  %vm1265_vm9 = vcmp.eq.s32.totalorder %v1263_v8, 0 }
  0xd1   :  { %v533_v41 = vsel %vm531_vm4, %v532_v30, %v1617_v28  ;;  %v1166_v37 = vsel %vm1164_vm5, %v532_v30, %v1617_v28  ;;  %v1621_v36 = vpop.eup %1620  ;;  %1622 = vcosq.f32 %v624_v10  ;;  %v150_v15 = vmul.f32 %v1619_v25, %v2476_v17 }
  0xd2   :  { %v530_v53 = vsel %vm528_vm6, %v1615_v26, %v529_v20  ;;  %v1163_v45 = vsel %vm1161_vm8, %v1615_v26, %v529_v20  ;;  %1624 = vsinq.f32 %v624_v10  ;;  %v78_v3 = vmul.f32 %v1621_v36, %v1834_v50 }
  0xd3   :  { %v534_v22 = vsel %vm527_vm13, %v530_v53, %v533_v41  ;;  %v1167_v48 = vsel %vm1160_vm15, %v1163_v45, %v1166_v37  ;;  %v152_v55 = vsel %vm151_vm0, %v2476_v17, %v150_v15  ;;  %vm1264_vm4 = vcmp.lt.s32.totalorder %v1263_v8, 2 }
  0xd4   :  { %v535_v42 = vsel %vm525_vm10, nan, %v534_v22  ;;  %v1168_v54 = vsel %vm525_vm10, nan, %v1167_v48  ;;  %v80_v58 = vsel %vm79_vm2, %v1834_v50, %v78_v3  ;;  %v155_v56 = vsel %vm153_vm7, %v154_v33, %v152_v55 }
  0xd5   :  { %v847_v12 = vmul.f32 %v535_v42, %v217_v24  ;;  %v1483_v47 = vmul.f32 %v1168_v54, %v217_v24  ;;  %v83_v7 = vsel %vm81_vm12, %v82_v63, %v80_v58  ;;  %v212_v62 = vmul.f32 %v202_v61, %v155_v56 }
  0xd6   :  { %v191_v16 = vmul.f32 %v2481_v52, %v83_v7  ;;  %vm628_vm5 = vweird.f32 %v2219_v51 }
  0xd7   :  { %853 = vst [vmem:[%s2548_s6 + $0x20] sm:$0xff] %v847_v12  ;;  %1489 = vst [vmem:[%s2548_s6 + $0x30] sm:$0xff] %v1483_v47 }
  0xd8   :  { %v218_v43 = vadd.f32 %v212_v62, %v191_v16 }
  0xde   :  { %v1623_v14 = vpop.eup %1622 }
  0xdf   :  { %v1625_v40 = vpop.eup %1624  ;;  %v635_v5 = vxor.u32 2147483648, %v1623_v14 }
  0xe0   :  { %v632_v17 = vxor.u32 2147483648, %v1625_v40 }
  0xe1   :  { %v636_v50 = vsel %vm634_vm3, %v635_v5, %v1625_v40  ;;  %v1270_v38 = vsel %vm1268_vm14, %v635_v5, %v1625_v40 }
  0xe2   :  { %v633_v2 = vsel %vm631_vm1, %v1623_v14, %v632_v17  ;;  %v1267_v21 = vsel %vm1265_vm9, %v1623_v14, %v632_v17 }
  0xe3   :  { %v637_v9 = vsel %vm630_vm11, %v633_v2, %v636_v50  ;;  %v1271_v35 = vsel %vm1264_vm4, %v1267_v21, %v1270_v38 }
  0xe4   :  { %v638_v34 = vsel %vm628_vm5, nan, %v637_v9  ;;  %v1272_v59 = vsel %vm628_vm5, nan, %v1271_v35 }
  0xe5   :  { %v848_v44 = vmul.f32 %v638_v34, %v218_v43  ;;  %v1484_v18 = vmul.f32 %v1272_v59, %v218_v43 }
  0xe7   :  { %854 = vst [vmem:[%s2548_s6 + $0x28] sm:$0xff] %v848_v44  ;;  %1490 = vst [vmem:[%s2548_s6 + $0x38] sm:$0xff] %v1484_v18 }

// kernel: _impl.4
= control target key start
LH: loop header
LB: loop body
LE: loop exit
PB: predicated region body
PF: predicated region fallthrough
CT: control target
= control target key end

     0   :  { %7 = vsyncpa [#allocation3], 0  ;;  %s742_s9 = smov [#allocation2]   ;;  %s808_s0 = inlined_call_operand.vmem [shape: bf16[17,256], index: 0, kind: input, shape index: {}]   ;;  %s809_s1 = inlined_call_operand.hbm [shape: bf16[256,512], index: 1, kind: input, shape index: {}]   ;;  %s810_s2 = inlined_call_operand.vmem [shape: f32[17,512], index: 2, kind: output, shape index: {}]  }
   0x1   :  { %s15_s10 = sshll.u32 %s742_s9, 4  ;;  %s16_s10 = int_to_ptr.vmem [resolvable:$true] %s15_s10 }
   0x2   :  { %s728_s11 = scalar_lea.vmem %s16_s10, 8192  ;;  %p733_p1 = scmp.lt.s32.totalorder %s16_s10, %s16_s10 }
   0x3   :  { %p729_p0 = scmp.ne.s32.totalorder %s16_s10, %s728_s11  ;;  %p734_p2 = scmp.lt.s32.totalorder %s728_s11, %s728_s11 }
   0x5   :  { %p735_p3 = por %p734_p2, %p733_p1 }
   0x7   :  { %p736_p4 = pnand %p735_p3, %p729_p0 }
   0x9   :  { %739 = shalt.err (!%p736_p4)
}
   0xa   :  { %s743_s12 = smov 256   ;;  %s744_s13 = smov 16  }
   0xb   :  { %21 = dma.hbm_to_vmem [thread:$0]  %s809_s1, 8192, %s16_s10, [#allocation3], %s743_s12, %s743_s12, %s744_s13  }
   0xc   :  { %740 = dma.done.wait [#allocation3], 8192  }
   0xd   :  { %741 = vsyncadd [#allocation3], 4294959104  ;;  %v619_v0 = vld [vmem:[#allocation2 + $0xe4] ss:$16 sps:$4 sm:$0xff]   ;;  %v621_v1 = vld [vmem:[#allocation2 + $0xec] ss:$16 sps:$4 sm:$0xff]  }
   0xe   :  { %429 = vmatprep.subr.bf16.mxu0 %v619_v0  ;;  %v623_v2 = vld [vmem:[#allocation2 + $0xe0] ss:$16 sps:$4 sm:$0xff]   ;;  %v624_v3 = vld [vmem:[#allocation2 + $0xe8] ss:$16 sps:$4 sm:$0xff]   ;;  %480 = vmatprep.subr.bf16.mxu1 %v621_v1  ;;  %v625_v4 = vld [vmem:[#allocation2 + $0xc4] ss:$16 sps:$4 sm:$0xff]  }
   0xf   :  { %430 = vmatpush1.bf16.msra.mxu0 %v623_v2  ;;  %481 = vmatpush1.bf16.msra.mxu1 %v624_v3  ;;  %v627_v5 = vld [vmem:[#allocation2 + $0xcc] ss:$16 sps:$4 sm:$0xff]   ;;  %v629_v6 = vld [vmem:[#allocation2 + $0xc0] ss:$16 sps:$4 sm:$0xff]   ;;  %v630_v7 = vld [vmem:[#allocation2 + $0xc8] ss:$16 sps:$4 sm:$0xff]  }
  0x10   :  { %431 = vmatprep.subr.bf16.mxu0 %v625_v4  ;;  %482 = vmatprep.subr.bf16.mxu1 %v627_v5  ;;  %v631_v8 = vld [vmem:[#allocation2 + $0xa4] ss:$16 sps:$4 sm:$0xff]   ;;  %v633_v9 = vld [vmem:[#allocation2 + $0xac] ss:$16 sps:$4 sm:$0xff]   ;;  %v635_v10 = vld [vmem:[#allocation2 + $0xa0] ss:$16 sps:$4 sm:$0xff]  }
  0x11   :  { %v636_v11 = vld [vmem:[#allocation2 + $0xa8] ss:$16 sps:$4 sm:$0xff]   ;;  %v637_v12 = vld [vmem:[#allocation2 + $0x84] ss:$16 sps:$4 sm:$0xff]   ;;  %v639_v13 = vld [vmem:[#allocation2 + $0x8c] ss:$16 sps:$4 sm:$0xff]  }
  0x12   :  { %v641_v14 = vld [vmem:[#allocation2 + $0x80] ss:$16 sps:$4 sm:$0xff]   ;;  %v642_v15 = vld [vmem:[#allocation2 + $0x88] ss:$16 sps:$4 sm:$0xff]   ;;  %v643_v16 = vld [vmem:[#allocation2 + $0x64] ss:$16 sps:$4 sm:$0xff]  }
  0x13   :  { %432 = vmatpush1.bf16.msra.mxu0 %v629_v6  ;;  %483 = vmatpush1.bf16.msra.mxu1 %v630_v7  ;;  %v645_v17 = vld [vmem:[#allocation2 + $0x6c] ss:$16 sps:$4 sm:$0xff]   ;;  %v647_v18 = vld [vmem:[#allocation2 + $0x60] ss:$16 sps:$4 sm:$0xff]   ;;  %v648_v19 = vld [vmem:[#allocation2 + $0x68] ss:$16 sps:$4 sm:$0xff]  }
  0x14   :  { %433 = vmatprep.subr.bf16.mxu0 %v631_v8  ;;  %484 = vmatprep.subr.bf16.mxu1 %v633_v9  ;;  %v649_v20 = vld [vmem:[#allocation2 + $0x44] ss:$16 sps:$4 sm:$0xff]   ;;  %v651_v21 = vld [vmem:[#allocation2 + $0x4c] ss:$16 sps:$4 sm:$0xff]   ;;  %v653_v22 = vld [vmem:[#allocation2 + $0x40] ss:$16 sps:$4 sm:$0xff]  }
  0x15   :  { %v654_v23 = vld [vmem:[#allocation2 + $0x48] ss:$16 sps:$4 sm:$0xff]   ;;  %v655_v24 = vld [vmem:[#allocation2 + $0x24] ss:$16 sps:$4 sm:$0xff]   ;;  %v657_v25 = vld [vmem:[#allocation2 + $0x2c] ss:$16 sps:$4 sm:$0xff]  }
  0x16   :  { %v659_v26 = vld [vmem:[#allocation2 + $0x20] ss:$16 sps:$4 sm:$0xff]   ;;  %v660_v27 = vld [vmem:[#allocation2 + $0x28] ss:$16 sps:$4 sm:$0xff]   ;;  %v661_v28 = vld [vmem:[#allocation2 + $0x4] ss:$16 sps:$4 sm:$0xff]  }
  0x17   :  { %434 = vmatpush1.bf16.msra.mxu0 %v635_v10  ;;  %485 = vmatpush1.bf16.msra.mxu1 %v636_v11  ;;  %v663_v29 = vld [vmem:[#allocation2 + $0xc] ss:$16 sps:$4 sm:$0xff]   ;;  %v665_v30 = vld [vmem:[#allocation2] ss:$16 sps:$4 sm:$0xff]   ;;  %v666_v31 = vld [vmem:[#allocation2 + $0x8] ss:$16 sps:$4 sm:$0xff]  }
  0x18   :  { %435 = vmatprep.subr.bf16.mxu0 %v637_v12  ;;  %486 = vmatprep.subr.bf16.mxu1 %v639_v13  ;;  %v667_v32 = vld [vmem:[#allocation2 + $0x1e4] ss:$16 sps:$4 sm:$0xff]   ;;  %v669_v33 = vld [vmem:[#allocation2 + $0x1ec] ss:$16 sps:$4 sm:$0xff]   ;;  %v671_v34 = vld [vmem:[#allocation2 + $0x1e0] ss:$16 sps:$4 sm:$0xff]  }
  0x19   :  { %v672_v35 = vld [vmem:[#allocation2 + $0x1e8] ss:$16 sps:$4 sm:$0xff]   ;;  %v673_v36 = vld [vmem:[#allocation2 + $0x1c4] ss:$16 sps:$4 sm:$0xff]   ;;  %v675_v37 = vld [vmem:[#allocation2 + $0x1cc] ss:$16 sps:$4 sm:$0xff]  }
  0x1a   :  { %v677_v38 = vld [vmem:[#allocation2 + $0x1c0] ss:$16 sps:$4 sm:$0xff]   ;;  %v678_v39 = vld [vmem:[#allocation2 + $0x1c8] ss:$16 sps:$4 sm:$0xff]   ;;  %v679_v40 = vld [vmem:[#allocation2 + $0x1a4] ss:$16 sps:$4 sm:$0xff]  }
  0x1b   :  { %436 = vmatpush1.bf16.msra.mxu0 %v641_v14  ;;  %487 = vmatpush1.bf16.msra.mxu1 %v642_v15  ;;  %v681_v41 = vld [vmem:[#allocation2 + $0x1ac] ss:$16 sps:$4 sm:$0xff]   ;;  %v683_v42 = vld [vmem:[#allocation2 + $0x1a0] ss:$16 sps:$4 sm:$0xff]   ;;  %v684_v43 = vld [vmem:[#allocation2 + $0x1a8] ss:$16 sps:$4 sm:$0xff]  }
  0x1c   :  { %437 = vmatprep.subr.bf16.mxu0 %v643_v16  ;;  %488 = vmatprep.subr.bf16.mxu1 %v645_v17  ;;  %v685_v44 = vld [vmem:[#allocation2 + $0x184] ss:$16 sps:$4 sm:$0xff]   ;;  %v687_v45 = vld [vmem:[#allocation2 + $0x18c] ss:$16 sps:$4 sm:$0xff]   ;;  %v689_v47 = vld [vmem:[#allocation2 + $0x180] ss:$16 sps:$4 sm:$0xff]  }
  0x1d   :  { %v717_v46 = vld [vmem:[%s808_s0 + $0x4] ss:$8 sps:$4 sm:$0xff]   ;;  %v690_v48 = vld [vmem:[#allocation2 + $0x188] ss:$16 sps:$4 sm:$0xff]   ;;  %v695_v51 = vld [vmem:[#allocation2 + $0x160] ss:$16 sps:$4 sm:$0xff]  }
  0x1e   :  { %v691_v49 = vld [vmem:[#allocation2 + $0x164] ss:$16 sps:$4 sm:$0xff]   ;;  %v693_v50 = vld [vmem:[#allocation2 + $0x16c] ss:$16 sps:$4 sm:$0xff]   ;;  %461 = vmatprep.mubr.bf16.mxu0 %v717_v46  ;;  %512 = vmatprep.mubr.bf16.mxu1 %v717_v46  ;;  %v696_v52 = vld [vmem:[#allocation2 + $0x168] ss:$16 sps:$4 sm:$0xff]  }
  0x1f   :  { %438 = vmatpush1.bf16.msra.mxu0 %v647_v18  ;;  %489 = vmatpush1.bf16.msra.mxu1 %v648_v19  ;;  %v697_v53 = vld [vmem:[#allocation2 + $0x144] ss:$16 sps:$4 sm:$0xff]   ;;  %v699_v54 = vld [vmem:[#allocation2 + $0x14c] ss:$16 sps:$4 sm:$0xff]   ;;  %v701_v55 = vld [vmem:[#allocation2 + $0x140] ss:$16 sps:$4 sm:$0xff]  }
  0x20   :  { %439 = vmatprep.subr.bf16.mxu0 %v649_v20  ;;  %490 = vmatprep.subr.bf16.mxu1 %v651_v21  ;;  %v702_v56 = vld [vmem:[#allocation2 + $0x148] ss:$16 sps:$4 sm:$0xff]   ;;  %v703_v57 = vld [vmem:[#allocation2 + $0x124] ss:$16 sps:$4 sm:$0xff]   ;;  %v705_v58 = vld [vmem:[#allocation2 + $0x12c] ss:$16 sps:$4 sm:$0xff]  }
  0x21   :  { %v707_v59 = vld [vmem:[#allocation2 + $0x120] ss:$16 sps:$4 sm:$0xff]   ;;  %v708_v60 = vld [vmem:[#allocation2 + $0x128] ss:$16 sps:$4 sm:$0xff]   ;;  %v709_v61 = vld [vmem:[#allocation2 + $0x104] ss:$16 sps:$4 sm:$0xff]  }
  0x22   :  { %v711_v62 = vld [vmem:[#allocation2 + $0x10c] ss:$16 sps:$4 sm:$0xff]   ;;  %v713_v63 = vld [vmem:[#allocation2 + $0x100] ss:$16 sps:$4 sm:$0xff]   ;;  %v714_v0 = vld [vmem:[#allocation2 + $0x108] ss:$16 sps:$4 sm:$0xff]  }
  0x23   :  { %440 = vmatpush1.bf16.msra.mxu0 %v653_v22  ;;  %491 = vmatpush1.bf16.msra.mxu1 %v654_v23  ;;  %v27_v1 = vld [vmem:[%s808_s0 + $0x10] sm:$0x11]  ;;  %v715_v2 = vld [vmem:[%s808_s0] ss:$8 sps:$4 sm:$0xff]  }
  0x24   :  { %441 = vmatprep.subr.bf16.mxu0 %v655_v24  ;;  %492 = vmatprep.subr.bf16.mxu1 %v657_v25  ;;  %v551_v3 = vcombine.high %v27_v1, %v27_v1  ;;  %v550_v4 = vcombine.low %v27_v1, %v27_v1 }
  0x27   :  { %442 = vmatpush1.bf16.msra.mxu0 %v659_v26  ;;  %493 = vmatpush1.bf16.msra.mxu1 %v660_v27 }
  0x28   :  { %443 = vmatprep.subr.bf16.mxu0 %v661_v28  ;;  %494 = vmatprep.subr.bf16.mxu1 %v663_v29 }
  0x2b   :  { %444 = vmatpush1.bf16.msra.mxu0 %v665_v30  ;;  %495 = vmatpush1.bf16.msra.mxu1 %v666_v31 }
  0x2c   :  { %445 = vmatprep.subr.bf16.mxu0 %v667_v32  ;;  %496 = vmatprep.subr.bf16.mxu1 %v669_v33 }
  0x2f   :  { %446 = vmatpush2.bf16.msra.mxu0 %v671_v34  ;;  %497 = vmatpush2.bf16.msra.mxu1 %v672_v35 }
  0x30   :  { %447 = vmatprep.subr.bf16.mxu0 %v673_v36  ;;  %498 = vmatprep.subr.bf16.mxu1 %v675_v37 }
  0x33   :  { %448 = vmatpush2.bf16.msra.mxu0 %v677_v38  ;;  %499 = vmatpush2.bf16.msra.mxu1 %v678_v39 }
  0x34   :  { %449 = vmatprep.subr.bf16.mxu0 %v679_v40  ;;  %500 = vmatprep.subr.bf16.mxu1 %v681_v41 }
  0x37   :  { %450 = vmatpush2.bf16.msra.mxu0 %v683_v42  ;;  %501 = vmatpush2.bf16.msra.mxu1 %v684_v43 }
  0x38   :  { %451 = vmatprep.subr.bf16.mxu0 %v685_v44  ;;  %502 = vmatprep.subr.bf16.mxu1 %v687_v45 }
  0x3b   :  { %452 = vmatpush2.bf16.msra.mxu0 %v689_v47  ;;  %503 = vmatpush2.bf16.msra.mxu1 %v690_v48 }
  0x3c   :  { %453 = vmatprep.subr.bf16.mxu0 %v691_v49  ;;  %504 = vmatprep.subr.bf16.mxu1 %v693_v50 }
  0x3f   :  { %454 = vmatpush2.bf16.msra.mxu0 %v695_v51  ;;  %505 = vmatpush2.bf16.msra.mxu1 %v696_v52 }
  0x40   :  { %455 = vmatprep.subr.bf16.mxu0 %v697_v53  ;;  %506 = vmatprep.subr.bf16.mxu1 %v699_v54 }
  0x43   :  { %456 = vmatpush2.bf16.msra.mxu0 %v701_v55  ;;  %507 = vmatpush2.bf16.msra.mxu1 %v702_v56 }
  0x44   :  { %457 = vmatprep.subr.bf16.mxu0 %v703_v57  ;;  %508 = vmatprep.subr.bf16.mxu1 %v705_v58 }
  0x47   :  { %458 = vmatpush2.bf16.msra.mxu0 %v707_v59  ;;  %509 = vmatpush2.bf16.msra.mxu1 %v708_v60 }
  0x48   :  { %459 = vmatprep.subr.bf16.mxu0 %v709_v61  ;;  %510 = vmatprep.subr.bf16.mxu1 %v711_v62 }
  0x4b   :  { %460 = vmatpush2.bf16.msra.mxu0 %v713_v63  ;;  %511 = vmatpush2.bf16.msra.mxu1 %v714_v0 }
  0x4e   :  { %462 = vmatmul.mubr.bf16.vlgmr.msra.gmra.mxu0 %v715_v2  ;;  %513 = vmatmul.mubr.bf16.vlgmr.msra.gmra.mxu1 %v715_v2 }
  0x4f   :  { %471 = vmatprep.mubr.bf16.mxu0 %v551_v3  ;;  %522 = vmatprep.mubr.bf16.mxu1 %v551_v3 }
  0x56   :  { %472 = vmatmul.mubr.bf16.gmra.mxu0 %v550_v4  ;;  %523 = vmatmul.mubr.bf16.gmra.mxu1 %v550_v4 }
 0x10e   :  { %v463_v5 = vpop.f32.mrf.mxu0  ;;  %v514_v6 = vpop.f32.mrf.mxu1 }
 0x10f   :  { %531 = vst [vmem:[%s810_s2] sm:$0xff] %v463_v5  ;;  %533 = vst [vmem:[%s810_s2 + $0x10] sm:$0xff] %v514_v6 }
 0x110   :  { %v465_v7 = vpop.f32.mrf.mxu0  ;;  %v516_v8 = vpop.f32.mrf.mxu1 }
 0x111   :  { %532 = vst [vmem:[%s810_s2 + $0x8] sm:$0xff] %v465_v7  ;;  %534 = vst [vmem:[%s810_s2 + $0x18] sm:$0xff] %v516_v8 }
 0x112   :  { %v467_v9 = vpop.f32.mrf.mxu0  ;;  %v518_v10 = vpop.f32.mrf.mxu1 }
 0x113   :  { %535 = vst [vmem:[%s810_s2 + $0x20] sm:$0xff] %v467_v9  ;;  %537 = vst [vmem:[%s810_s2 + $0x30] sm:$0xff] %v518_v10 }
 0x114   :  { %v469_v11 = vpop.f32.mrf.mxu0  ;;  %v520_v12 = vpop.f32.mrf.mxu1 }
 0x115   :  { %536 = vst [vmem:[%s810_s2 + $0x28] sm:$0xff] %v469_v11  ;;  %538 = vst [vmem:[%s810_s2 + $0x38] sm:$0xff] %v520_v12 }
 0x116   :  { %v473_v13 = vpop.f32.mrf.mxu0  ;;  %v524_v14 = vpop.f32.mrf.mxu1 }
 0x117   :  { %539 = vst [vmem:[%s810_s2 + $0x40] sm:$0x1] %v473_v13  ;;  %541 = vst [vmem:[%s810_s2 + $0x50] sm:$0x1] %v524_v14 }
 0x118   :  { %v475_v15 = vpop.f32.mrf.mxu0  ;;  %v526_v16 = vpop.f32.mrf.mxu1 }
 0x119   :  { %540 = vst [vmem:[%s810_s2 + $0x48] sm:$0x1] %v475_v15  ;;  %542 = vst [vmem:[%s810_s2 + $0x58] sm:$0x1] %v526_v16 }
 0x11a   :  { %v477_v17 = vpop.f32.mrf.mxu0  ;;  %v528_v18 = vpop.f32.mrf.mxu1 }
 0x11c   :  { %v478_v19 = vpop.f32.mrf.mxu0  ;;  %v529_v20 = vpop.f32.mrf.mxu1 }
 0x11d   :  { %547 = vsyncpa [#allocation3], 1 }

// kernel: _impl.6
= control target key start
LH: loop header
LB: loop body
LE: loop exit
PB: predicated region body
PF: predicated region fallthrough
CT: control target
= control target key end

     0   :  { %s968_s1 = inlined_call_operand.vmem [shape: bf16[512,256], index: 1, kind: input, shape index: {}]   ;;  %s969_s0 = inlined_call_operand.vmem [shape: bf16[20,512], index: 0, kind: input, shape index: {}]   ;;  %s970_s2 = inlined_call_operand.vmem [shape: f32[20,256], index: 2, kind: output, shape index: {}]  }
   0x1   :  { %v619_v0 = vld [vmem:[%s968_s1 + $0x74] ss:$8 sps:$4 sm:$0xff]   ;;  %v623_v2 = vld [vmem:[%s968_s1 + $0x70] ss:$8 sps:$4 sm:$0xff]   ;;  %v625_v4 = vld [vmem:[%s968_s1 + $0x64] ss:$8 sps:$4 sm:$0xff]  }
   0x2   :  { %v621_v1 = vld [vmem:[%s968_s1 + $0x174] ss:$8 sps:$4 sm:$0xff]   ;;  %435 = vmatprep.subr.bf16.mxu0 %v619_v0  ;;  %v624_v3 = vld [vmem:[%s968_s1 + $0x170] ss:$8 sps:$4 sm:$0xff]   ;;  %v627_v5 = vld [vmem:[%s968_s1 + $0x164] ss:$8 sps:$4 sm:$0xff]  }
   0x3   :  { %486 = vmatprep.subr.bf16.mxu1 %v621_v1  ;;  %436 = vmatpush1.bf16.msra.mxu0 %v623_v2  ;;  %v629_v6 = vld [vmem:[%s968_s1 + $0x60] ss:$8 sps:$4 sm:$0xff]   ;;  %v631_v8 = vld [vmem:[%s968_s1 + $0x54] ss:$8 sps:$4 sm:$0xff]   ;;  %v635_v10 = vld [vmem:[%s968_s1 + $0x50] ss:$8 sps:$4 sm:$0xff]  }
   0x4   :  { %487 = vmatpush1.bf16.msra.mxu1 %v624_v3  ;;  %437 = vmatprep.subr.bf16.mxu0 %v625_v4  ;;  %v630_v7 = vld [vmem:[%s968_s1 + $0x160] ss:$8 sps:$4 sm:$0xff]   ;;  %v633_v9 = vld [vmem:[%s968_s1 + $0x154] ss:$8 sps:$4 sm:$0xff]   ;;  %v636_v11 = vld [vmem:[%s968_s1 + $0x150] ss:$8 sps:$4 sm:$0xff]  }
   0x5   :  { %488 = vmatprep.subr.bf16.mxu1 %v627_v5  ;;  %v637_v12 = vld [vmem:[%s968_s1 + $0x44] ss:$8 sps:$4 sm:$0xff]   ;;  %v641_v14 = vld [vmem:[%s968_s1 + $0x40] ss:$8 sps:$4 sm:$0xff]   ;;  %v643_v16 = vld [vmem:[%s968_s1 + $0x34] ss:$8 sps:$4 sm:$0xff]  }
   0x6   :  { %v639_v13 = vld [vmem:[%s968_s1 + $0x144] ss:$8 sps:$4 sm:$0xff]   ;;  %v642_v15 = vld [vmem:[%s968_s1 + $0x140] ss:$8 sps:$4 sm:$0xff]   ;;  %v645_v17 = vld [vmem:[%s968_s1 + $0x134] ss:$8 sps:$4 sm:$0xff]  }
   0x7   :  { %438 = vmatpush1.bf16.msra.mxu0 %v629_v6  ;;  %v647_v18 = vld [vmem:[%s968_s1 + $0x30] ss:$8 sps:$4 sm:$0xff]   ;;  %v649_v20 = vld [vmem:[%s968_s1 + $0x24] ss:$8 sps:$4 sm:$0xff]   ;;  %v653_v22 = vld [vmem:[%s968_s1 + $0x20] ss:$8 sps:$4 sm:$0xff]  }
   0x8   :  { %489 = vmatpush1.bf16.msra.mxu1 %v630_v7  ;;  %439 = vmatprep.subr.bf16.mxu0 %v631_v8  ;;  %v648_v19 = vld [vmem:[%s968_s1 + $0x130] ss:$8 sps:$4 sm:$0xff]   ;;  %v651_v21 = vld [vmem:[%s968_s1 + $0x124] ss:$8 sps:$4 sm:$0xff]   ;;  %v654_v23 = vld [vmem:[%s968_s1 + $0x120] ss:$8 sps:$4 sm:$0xff]  }
   0x9   :  { %490 = vmatprep.subr.bf16.mxu1 %v633_v9  ;;  %v655_v24 = vld [vmem:[%s968_s1 + $0x14] ss:$8 sps:$4 sm:$0xff]   ;;  %v659_v26 = vld [vmem:[%s968_s1 + $0x10] ss:$8 sps:$4 sm:$0xff]   ;;  %v661_v28 = vld [vmem:[%s968_s1 + $0x4] ss:$8 sps:$4 sm:$0xff]  }
   0xa   :  { %v657_v25 = vld [vmem:[%s968_s1 + $0x114] ss:$8 sps:$4 sm:$0xff]   ;;  %v660_v27 = vld [vmem:[%s968_s1 + $0x110] ss:$8 sps:$4 sm:$0xff]   ;;  %v663_v29 = vld [vmem:[%s968_s1 + $0x104] ss:$8 sps:$4 sm:$0xff]  }
   0xb   :  { %440 = vmatpush1.bf16.msra.mxu0 %v635_v10  ;;  %v665_v30 = vld [vmem:[%s968_s1] ss:$8 sps:$4 sm:$0xff]   ;;  %v667_v32 = vld [vmem:[%s968_s1 + $0xf4] ss:$8 sps:$4 sm:$0xff]   ;;  %v671_v34 = vld [vmem:[%s968_s1 + $0xf0] ss:$8 sps:$4 sm:$0xff]  }
   0xc   :  { %491 = vmatpush1.bf16.msra.mxu1 %v636_v11  ;;  %441 = vmatprep.subr.bf16.mxu0 %v637_v12  ;;  %v666_v31 = vld [vmem:[%s968_s1 + $0x100] ss:$8 sps:$4 sm:$0xff]   ;;  %v669_v33 = vld [vmem:[%s968_s1 + $0x1f4] ss:$8 sps:$4 sm:$0xff]   ;;  %v672_v35 = vld [vmem:[%s968_s1 + $0x1f0] ss:$8 sps:$4 sm:$0xff]  }
   0xd   :  { %492 = vmatprep.subr.bf16.mxu1 %v639_v13  ;;  %v673_v36 = vld [vmem:[%s968_s1 + $0xe4] ss:$8 sps:$4 sm:$0xff]   ;;  %v677_v38 = vld [vmem:[%s968_s1 + $0xe0] ss:$8 sps:$4 sm:$0xff]   ;;  %v679_v40 = vld [vmem:[%s968_s1 + $0xd4] ss:$8 sps:$4 sm:$0xff]  }
   0xe   :  { %v675_v37 = vld [vmem:[%s968_s1 + $0x1e4] ss:$8 sps:$4 sm:$0xff]   ;;  %v678_v39 = vld [vmem:[%s968_s1 + $0x1e0] ss:$8 sps:$4 sm:$0xff]   ;;  %v681_v41 = vld [vmem:[%s968_s1 + $0x1d4] ss:$8 sps:$4 sm:$0xff]  }
   0xf   :  { %442 = vmatpush1.bf16.msra.mxu0 %v641_v14  ;;  %v683_v42 = vld [vmem:[%s968_s1 + $0xd0] ss:$8 sps:$4 sm:$0xff]   ;;  %v685_v44 = vld [vmem:[%s968_s1 + $0xc4] ss:$8 sps:$4 sm:$0xff]   ;;  %v689_v46 = vld [vmem:[%s968_s1 + $0xc0] ss:$8 sps:$4 sm:$0xff]  }
  0x10   :  { %493 = vmatpush1.bf16.msra.mxu1 %v642_v15  ;;  %443 = vmatprep.subr.bf16.mxu0 %v643_v16  ;;  %v684_v43 = vld [vmem:[%s968_s1 + $0x1d0] ss:$8 sps:$4 sm:$0xff]   ;;  %v687_v45 = vld [vmem:[%s968_s1 + $0x1c4] ss:$8 sps:$4 sm:$0xff]   ;;  %v690_v48 = vld [vmem:[%s968_s1 + $0x1c0] ss:$8 sps:$4 sm:$0xff]  }
  0x11   :  { %494 = vmatprep.subr.bf16.mxu1 %v645_v17  ;;  %v717_v47 = vld [vmem:[%s969_s0 + $0x4] ss:$16 sps:$4 sm:$0xff]   ;;  %v720_v51 = vld [vmem:[%s969_s0 + $0xc] ss:$16 sps:$4 sm:$0xff]   ;;  %v695_v52 = vld [vmem:[%s968_s1 + $0xb0] ss:$8 sps:$4 sm:$0xff]  }
  0x12   :  { %v691_v49 = vld [vmem:[%s968_s1 + $0xb4] ss:$8 sps:$4 sm:$0xff]   ;;  %467 = vmatprep.mubr.bf16.mxu0 %v717_v47  ;;  %518 = vmatprep.mubr.bf16.mxu1 %v720_v51  ;;  %v696_v53 = vld [vmem:[%s968_s1 + $0x1b0] ss:$8 sps:$4 sm:$0xff]   ;;  %v697_v54 = vld [vmem:[%s968_s1 + $0xa4] ss:$8 sps:$4 sm:$0xff]  }
  0x13   :  { %444 = vmatpush1.bf16.msra.mxu0 %v647_v18  ;;  %v693_v50 = vld [vmem:[%s968_s1 + $0x1b4] ss:$8 sps:$4 sm:$0xff]   ;;  %v699_v55 = vld [vmem:[%s968_s1 + $0x1a4] ss:$8 sps:$4 sm:$0xff]   ;;  %v701_v56 = vld [vmem:[%s968_s1 + $0xa0] ss:$8 sps:$4 sm:$0xff]  }
  0x14   :  { %495 = vmatpush1.bf16.msra.mxu1 %v648_v19  ;;  %445 = vmatprep.subr.bf16.mxu0 %v649_v20  ;;  %v702_v57 = vld [vmem:[%s968_s1 + $0x1a0] ss:$8 sps:$4 sm:$0xff]   ;;  %v703_v58 = vld [vmem:[%s968_s1 + $0x94] ss:$8 sps:$4 sm:$0xff]   ;;  %v707_v60 = vld [vmem:[%s968_s1 + $0x90] ss:$8 sps:$4 sm:$0xff]  }
  0x15   :  { %496 = vmatprep.subr.bf16.mxu1 %v651_v21  ;;  %v705_v59 = vld [vmem:[%s968_s1 + $0x194] ss:$8 sps:$4 sm:$0xff]   ;;  %v708_v61 = vld [vmem:[%s968_s1 + $0x190] ss:$8 sps:$4 sm:$0xff]   ;;  %v709_v62 = vld [vmem:[%s968_s1 + $0x84] ss:$8 sps:$4 sm:$0xff]  }
  0x16   :  { %v711_v63 = vld [vmem:[%s968_s1 + $0x184] ss:$8 sps:$4 sm:$0xff]   ;;  %v713_v0 = vld [vmem:[%s968_s1 + $0x80] ss:$8 sps:$4 sm:$0xff]  }
  0x17   :  { %446 = vmatpush1.bf16.msra.mxu0 %v653_v22  ;;  %v714_v1 = vld [vmem:[%s968_s1 + $0x180] ss:$8 sps:$4 sm:$0xff]  }
  0x18   :  { %497 = vmatpush1.bf16.msra.mxu1 %v654_v23  ;;  %447 = vmatprep.subr.bf16.mxu0 %v655_v24  ;;  %v15_v2 = vld [vmem:[%s969_s0 + $0x20] sm:$0x33]  ;;  %v16_v3 = vld [vmem:[%s969_s0 + $0x28] sm:$0x33] }
  0x19   :  { %498 = vmatprep.subr.bf16.mxu1 %v657_v25  ;;  %v715_v4 = vld [vmem:[%s969_s0] ss:$16 sps:$4 sm:$0xff]   ;;  %v718_v5 = vld [vmem:[%s969_s0 + $0x8] ss:$16 sps:$4 sm:$0xff]   ;;  %v552_v6 = vcombine.high %v15_v2, %v15_v2  ;;  %v554_v7 = vcombine.high %v16_v3, %v16_v3  ;;  %v551_v8 = vcombine.low %v15_v2, %v15_v2  ;;  %v553_v9 = vcombine.low %v16_v3, %v16_v3 }
  0x1b   :  { %448 = vmatpush1.bf16.msra.mxu0 %v659_v26 }
  0x1c   :  { %499 = vmatpush1.bf16.msra.mxu1 %v660_v27  ;;  %449 = vmatprep.subr.bf16.mxu0 %v661_v28 }
  0x1d   :  { %500 = vmatprep.subr.bf16.mxu1 %v663_v29 }
  0x1f   :  { %450 = vmatpush1.bf16.msra.mxu0 %v665_v30 }
  0x20   :  { %501 = vmatpush1.bf16.msra.mxu1 %v666_v31  ;;  %451 = vmatprep.subr.bf16.mxu0 %v667_v32 }
  0x21   :  { %502 = vmatprep.subr.bf16.mxu1 %v669_v33 }
  0x23   :  { %452 = vmatpush2.bf16.msra.mxu0 %v671_v34 }
  0x24   :  { %503 = vmatpush2.bf16.msra.mxu1 %v672_v35  ;;  %453 = vmatprep.subr.bf16.mxu0 %v673_v36 }
  0x25   :  { %504 = vmatprep.subr.bf16.mxu1 %v675_v37 }
  0x27   :  { %454 = vmatpush2.bf16.msra.mxu0 %v677_v38 }
  0x28   :  { %505 = vmatpush2.bf16.msra.mxu1 %v678_v39  ;;  %455 = vmatprep.subr.bf16.mxu0 %v679_v40 }
  0x29   :  { %506 = vmatprep.subr.bf16.mxu1 %v681_v41 }
  0x2b   :  { %456 = vmatpush2.bf16.msra.mxu0 %v683_v42 }
  0x2c   :  { %507 = vmatpush2.bf16.msra.mxu1 %v684_v43  ;;  %457 = vmatprep.subr.bf16.mxu0 %v685_v44 }
  0x2d   :  { %508 = vmatprep.subr.bf16.mxu1 %v687_v45 }
  0x2f   :  { %458 = vmatpush2.bf16.msra.mxu0 %v689_v46 }
  0x30   :  { %509 = vmatpush2.bf16.msra.mxu1 %v690_v48  ;;  %459 = vmatprep.subr.bf16.mxu0 %v691_v49 }
  0x31   :  { %510 = vmatprep.subr.bf16.mxu1 %v693_v50 }
  0x33   :  { %460 = vmatpush2.bf16.msra.mxu0 %v695_v52 }
  0x34   :  { %511 = vmatpush2.bf16.msra.mxu1 %v696_v53  ;;  %461 = vmatprep.subr.bf16.mxu0 %v697_v54 }
  0x35   :  { %512 = vmatprep.subr.bf16.mxu1 %v699_v55 }
  0x37   :  { %462 = vmatpush2.bf16.msra.mxu0 %v701_v56 }
  0x38   :  { %513 = vmatpush2.bf16.msra.mxu1 %v702_v57  ;;  %463 = vmatprep.subr.bf16.mxu0 %v703_v58 }
  0x39   :  { %514 = vmatprep.subr.bf16.mxu1 %v705_v59 }
  0x3b   :  { %464 = vmatpush2.bf16.msra.mxu0 %v707_v60 }
  0x3c   :  { %515 = vmatpush2.bf16.msra.mxu1 %v708_v61  ;;  %465 = vmatprep.subr.bf16.mxu0 %v709_v62 }
  0x3d   :  { %516 = vmatprep.subr.bf16.mxu1 %v711_v63 }
  0x3f   :  { %466 = vmatpush2.bf16.msra.mxu0 %v713_v0 }
  0x40   :  { %517 = vmatpush2.bf16.msra.mxu1 %v714_v1 }
  0x42   :  { %468 = vmatmul.mubr.bf16.vlgmr.msra.gmra.mxu0 %v715_v4 }
  0x43   :  { %519 = vmatmul.mubr.bf16.vlgmr.msra.gmra.mxu1 %v718_v5  ;;  %477 = vmatprep.mubr.bf16.mxu0 %v552_v6 }
  0x44   :  { %528 = vmatprep.mubr.bf16.mxu1 %v554_v7 }
  0x4a   :  { %478 = vmatmul.mubr.bf16.gmra.mxu0 %v551_v8 }
  0x4b   :  { %529 = vmatmul.mubr.bf16.gmra.mxu1 %v553_v9 }
 0x102   :  { %v469_v10 = vpop.f32.mrf.mxu0 }
 0x103   :  { %v520_v11 = vpop.f32.mrf.mxu1 }
 0x104   :  { %v521_v12 = vadd.f32 %v520_v11, %v469_v10  ;;  %v471_v13 = vpop.f32.mrf.mxu0 }
 0x105   :  { %v522_v14 = vpop.f32.mrf.mxu1 }
 0x106   :  { %537 = vst [vmem:[%s970_s2] sm:$0xff] %v521_v12  ;;  %v523_v15 = vadd.f32 %v522_v14, %v471_v13  ;;  %v473_v16 = vpop.f32.mrf.mxu0 }
 0x107   :  { %v524_v17 = vpop.f32.mrf.mxu1 }
 0x108   :  { %538 = vst [vmem:[%s970_s2 + $0x8] sm:$0xff] %v523_v15  ;;  %v525_v18 = vadd.f32 %v524_v17, %v473_v16  ;;  %v475_v19 = vpop.f32.mrf.mxu0 }
 0x109   :  { %v526_v20 = vpop.f32.mrf.mxu1 }
 0x10a   :  { %539 = vst [vmem:[%s970_s2 + $0x10] sm:$0xff] %v525_v18  ;;  %v527_v21 = vadd.f32 %v526_v20, %v475_v19  ;;  %v479_v22 = vpop.f32.mrf.mxu0 }
 0x10b   :  { %v530_v23 = vpop.f32.mrf.mxu1 }
 0x10c   :  { %540 = vst [vmem:[%s970_s2 + $0x18] sm:$0xff] %v527_v21  ;;  %v531_v24 = vadd.f32 %v530_v23, %v479_v22  ;;  %v481_v25 = vpop.f32.mrf.mxu0 }
 0x10d   :  { %v532_v26 = vpop.f32.mrf.mxu1 }
 0x10e   :  { %541 = vst [vmem:[%s970_s2 + $0x20] sm:$0xf] %v531_v24  ;;  %v533_v27 = vadd.f32 %v532_v26, %v481_v25  ;;  %v483_v28 = vpop.f32.mrf.mxu0 }
 0x10f   :  { %v534_v29 = vpop.f32.mrf.mxu1 }
 0x110   :  { %542 = vst [vmem:[%s970_s2 + $0x28] sm:$0xf] %v533_v27  ;;  %v484_v30 = vpop.f32.mrf.mxu0 }
 0x111   :  { %v535_v31 = vpop.f32.mrf.mxu1 }

// kernel: _impl.7
= control target key start
LH: loop header
LB: loop body
LE: loop exit
PB: predicated region body
PF: predicated region fallthrough
CT: control target
= control target key end

     0   :  { %s93_s0 = inlined_call_operand.vmem [shape: f32[8,128], index: 0, kind: input, shape index: {}]   ;;  %s94_s1 = inlined_call_operand.vmem [shape: f32[8,128], index: 1, kind: input, shape index: {}]   ;;  %s95_s2 = inlined_call_operand.vmem [shape: f32[8,128], index: 2, kind: input, shape index: {}]   ;;  %s96_s3 = inlined_call_operand.hbm [shape: f32[8,128], index: 3, kind: output, shape index: {}]  }
   0x1   :  { %v15_v0 = vld [vmem:[%s95_s2] sm:$0xff] }
   0x2   :  { %v17_v1 = vld [vmem:[%s93_s0] sm:$0xff]  ;;  %v16_v3 = vsub.f32 1.0, %v15_v0 }
   0x3   :  { %v19_v2 = vld [vmem:[%s94_s1] sm:$0xff] }
   0x4   :  { %v20_v4 = vmul.f32 %v19_v2, %v15_v0 }
   0x5   :  { %8 = vsyncpa [#allocation3], 0  ;;  %s60_s18 = smov [#allocation2]   ;;  %v18_v5 = vmul.f32 %v17_v1, %v16_v3 }
   0x6   :  { %s29_s19 = sshll.u32 %s60_s18, 4  ;;  %s30_s19 = int_to_ptr.vmem [resolvable:$true] %s29_s19 }
   0x7   :  { %v21_v6 = vadd.f32 %v20_v4, %v18_v5  ;;  %s38_s20 = scalar_lea.vmem %s30_s19, 128  ;;  %p43_p1 = scmp.lt.s32.totalorder %s30_s19, %s30_s19 }
   0x8   :  { %p39_p0 = scmp.ne.s32.totalorder %s30_s19, %s38_s20  ;;  %p44_p2 = scmp.lt.s32.totalorder %s38_s20, %s38_s20 }
   0x9   :  { %22 = vst [vmem:[#allocation2] sm:$0xff] %v21_v6 }
   0xa   :  { %p45_p3 = por %p44_p2, %p43_p1 }
   0xc   :  { %p46_p4 = pnand %p45_p3, %p39_p0 }
   0xe   :  { %49 = shalt.err (!%p46_p4)
}
   0xf   :  { %32 = dma.vmem_to_hbm [thread:$0]  %s30_s19, 128, %s96_s3, [#allocation3]  }
  0x10   :  { %58 = dma.done.wait [#allocation3], 128  }
  0x11   :  { %59 = vsyncadd [#allocation3], 4294967168 }
  0x12   :  { %36 = vsyncpa [#allocation3], 1 }

</bundles_post_ra>
